<compile_context>
chip_gen: v7x
topology: tpu7x:2x2x1
jax: 0.10.0
libtpu: 0.0.40
codegen_flags: <defaults>
</compile_context>

<pallas_src>
import math

import jax
import jax.numpy as jnp
from jax.experimental import pallas as pl
from jax.experimental.pallas import tpu as pltpu  # noqa: F401  (TPU backend import)

# ---------------- model hyperparameters (module defaults) ----------------
INPUT_SIZE = 9
HIDDEN_SIZE = 64
NUM_LAYERS = 2
OUTPUT_SIZE = 1
BATCH = 2
SEQ = 8
BATCH_PAD = 8              # pad batch to the sublane count -> tile-aligned per-step row slices

H = HIDDEN_SIZE
I = INPUT_SIZE
IPAD = 16                  # input feature dim padded to the bf16 sublane tile (zeros contribute 0)
G = 3 * H                  # fused gate width [r | z | n] = 192 lanes

# bf16 weight pack (W_ROWS, G): every block starts on a 16-row (bf16 sublane-tile) boundary.
O_WIH0 = 0                 # (IPAD, G)  layer-0 input weights,   columns [W_ir.T | W_iz.T | W_in.T]
O_WHH0 = O_WIH0 + IPAD     # (H, G)     layer-0 recurrent weights
O_WIH1 = O_WHH0 + H        # (H, G)     layer-1 input weights
O_WHH1 = O_WIH1 + H        # (H, G)     layer-1 recurrent weights
W_ROWS = O_WHH1 + H        # 208

# f32 bias / fc pack (B_ROWS, G)
B_ROWS = 8
R_B0, R_BHN0, R_B1, R_BHN1, R_FCB, R_FCW = 0, 1, 2, 3, 4, 5


def gru_predictor_kernel(x_ref, w_ref, b_ref, out_ref):
    T, BP = SEQ, BATCH_PAD

    # Fused bf16 weight blocks (resident in VMEM for the whole kernel).
    wih0 = w_ref[O_WIH0:O_WIH0 + IPAD, :]          # (16, 192)
    whh0 = w_ref[O_WHH0:O_WHH0 + H, :]             # (64, 192)
    wih1 = w_ref[O_WIH1:O_WIH1 + H, :]             # (64, 192)
    whh1 = w_ref[O_WHH1:O_WHH1 + H, :]             # (64, 192)

    # f32 biases; broadcasts hoisted once (JAX does not CSE broadcast_in_dim inside the loop).
    b0 = b_ref[R_B0:R_B0 + 1, :]                                        # (1, 192)
    b1b = jnp.broadcast_to(b_ref[R_B1:R_B1 + 1, :], (BP, G))            # (8, 192)
    bhn0b = jnp.broadcast_to(b_ref[R_BHN0:R_BHN0 + 1, 0:H], (BP, H))    # (8, 64)
    bhn1b = jnp.broadcast_to(b_ref[R_BHN1:R_BHN1 + 1, 0:H], (BP, H))    # (8, 64)
    fcb = b_ref[R_FCB:R_FCB + 1, 0:1]                                   # (1, 1)
    fcw = b_ref[R_FCW:R_FCW + 1, 0:H]                                   # (1, 64)

    # Hoisted layer-0 input projection: ONE bf16 matmul over all T*BP rows (off the serial chain).
    # b0 = [b_ir+b_hr | b_iz+b_hz | b_in] (b_hn stays inside r*(.)).
    gi0 = jnp.dot(x_ref[...], wih0, preferred_element_type=jnp.float32) + b0   # (T*BP, 192) f32

    def cell(gi, h_prev, whh, bhn_b):
        # gi: (BP, 3H) f32 input projection incl. combined [r|z] biases and b_in.
        # Single fused recurrent matmul per cell; h_prev==None (== zeros) skips it entirely.
        if h_prev is None:
            pre_rz = gi[:, 0:2 * H]
            gh_n = bhn_b
        else:
            gr = jnp.dot(h_prev.astype(jnp.bfloat16), whh,
                         preferred_element_type=jnp.float32)               # (BP, 192)
            pre_rz = gi[:, 0:2 * H] + gr[:, 0:2 * H]
            gh_n = gr[:, 2 * H:G] + bhn_b                                   # vreg-aligned slice
        rz = jax.nn.sigmoid(pre_rz)                  # fused r/z sigmoid: one EUP pass per cell
        r = rz[:, 0:H]
        z = rz[:, H:2 * H]
        n = jnp.tanh(gi[:, 2 * H:G] + r * gh_n)
        if h_prev is None:
            return n - z * n                         # == (1 - z) * n with h_prev = 0
        return n + z * (h_prev - n)                  # == (1 - z) * n + z * h_prev

    # Wavefront schedule: layer-0 step t+1 is independent of layer-1 step t -> they overlap.
    h0 = None
    h1 = None
    for t in range(T):                               # T is small & static -> fully unrolled
        r0 = t * BP                                  # 8-row aligned slice of the hoisted gi0
        h0 = cell(gi0[r0:r0 + BP, :], h0, whh0, bhn0b)
        gi1 = jnp.dot(h0.astype(jnp.bfloat16), wih1,
                      preferred_element_type=jnp.float32) + b1b             # off the critical chain
        h1 = cell(gi1, h1, whh1, bhn1b)

    # fc + ReLU on the top layer's last hidden state: f32 VPU mul + lane reduce (no 1-lane matmul).
    out = jnp.sum(h1 * fcw, axis=1, keepdims=True) + fcb                    # (BP, 1)
    out_ref[...] = jnp.maximum(out, 0.0)


def pack_params(params):
    """Pack PyTorch-layout GRU/Linear params once, at model-load time.

    Returns (w_bf16, b_f32): fused bf16 weight blocks + f32 bias/fc array."""
    (w_ih0, w_hh0, b_ih0, b_hh0, w_ih1, w_hh1, b_ih1, b_hh1, fc_w, fc_b) = params

    w = jnp.zeros((W_ROWS, G), jnp.float32)
    w = w.at[O_WIH0:O_WIH0 + I, :].set(w_ih0.T)      # (I, 3H): gate columns already [r|z|n]
    w = w.at[O_WHH0:O_WHH0 + H, :].set(w_hh0.T)
    w = w.at[O_WIH1:O_WIH1 + H, :].set(w_ih1.T)
    w = w.at[O_WHH1:O_WHH1 + H, :].set(w_hh1.T)

    b = jnp.zeros((B_ROWS, G), jnp.float32)
    b = b.at[R_B0, 0:2 * H].set(b_ih0[:2 * H] + b_hh0[:2 * H])   # layer0 [r|z] bias, pre-combined
    b = b.at[R_B0, 2 * H:G].set(b_ih0[2 * H:])                    # layer0 b_in
    b = b.at[R_BHN0, 0:H].set(b_hh0[2 * H:])                      # layer0 b_hn (stays inside r*(.))
    b = b.at[R_B1, 0:2 * H].set(b_ih1[:2 * H] + b_hh1[:2 * H])    # layer1 [r|z] bias
    b = b.at[R_B1, 2 * H:G].set(b_ih1[2 * H:])                    # layer1 b_in
    b = b.at[R_BHN1, 0:H].set(b_hh1[2 * H:])                      # layer1 b_hn
    b = b.at[R_FCB, 0].set(fc_b[0])                               # fc bias
    b = b.at[R_FCW, 0:H].set(fc_w[0, :])                          # fc weight row (kept f32)

    return w.astype(jnp.bfloat16), b


def _full_spec(shape):
    return pl.BlockSpec(shape, lambda: (0,) * len(shape))


def gru_predictor_forward(x, w_bf16, b_f32):
    """x: (B, T, INPUT_SIZE) f32 -> (B, OUTPUT_SIZE) f32. w_bf16/b_f32 from pack_params."""
    B, T, _ = x.shape
    assert T == SEQ and B <= BATCH_PAD

    # Pad batch to the sublane count, pad features to the bf16 tile, flatten time-major
    # (row = t * BATCH_PAD + b), cast to bf16 at the matmul boundary.
    xp = jnp.zeros((BATCH_PAD, T, IPAD), jnp.float32).at[:B, :, :I].set(x)
    x2d = jnp.transpose(xp, (1, 0, 2)).reshape(T * BATCH_PAD, IPAD).astype(jnp.bfloat16)

    out = pl.pallas_call(
        gru_predictor_kernel,
        out_shape=jax.ShapeDtypeStruct((BATCH_PAD, OUTPUT_SIZE), jnp.float32),
        grid=(),                                     # single invocation, everything VMEM-resident
        in_specs=[_full_spec((T * BATCH_PAD, IPAD)),
                  _full_spec((W_ROWS, G)),
                  _full_spec((B_ROWS, G))],
        out_specs=_full_spec((BATCH_PAD, OUTPUT_SIZE)),
    )(x2d, w_bf16, b_f32)
    return out[:B]


gru_predictor_forward_jit = jax.jit(gru_predictor_forward)


def init_params(key):
    """PyTorch-layout params with PyTorch-style init U(-1/sqrt(H), 1/sqrt(H))."""
    bound = 1.0 / math.sqrt(H)
    keys = jax.random.split(key, 10)

    def u(k, shape):
        return jax.random.uniform(k, shape, jnp.float32, -bound, bound)

    w_ih0 = u(keys[0], (3 * H, I)); w_hh0 = u(keys[1], (3 * H, H))
    b_ih0 = u(keys[2], (3 * H,));   b_hh0 = u(keys[3], (3 * H,))
    w_ih1 = u(keys[4], (3 * H, H)); w_hh1 = u(keys[5], (3 * H, H))
    b_ih1 = u(keys[6], (3 * H,));   b_hh1 = u(keys[7], (3 * H,))
    fc_w = u(keys[8], (OUTPUT_SIZE, H)); fc_b = u(keys[9], (OUTPUT_SIZE,))
    return (w_ih0, w_hh0, b_ih0, b_hh0, w_ih1, w_hh1, b_ih1, b_hh1, fc_w, fc_b)


def reference_forward(x, params):
    """Pure-JAX f32 replica of PyTorch GRUPredictor.forward (PyTorch weight layout)."""
    (w_ih0, w_hh0, b_ih0, b_hh0, w_ih1, w_hh1, b_ih1, b_hh1, fc_w, fc_b) = params
    B, T, _ = x.shape

    def cell(x_t, h, w_ih, w_hh, b_ih, b_hh):
        gi = x_t @ w_ih.T + b_ih
        gh = h @ w_hh.T + b_hh
        r = jax.nn.sigmoid(gi[:, :H] + gh[:, :H])
        z = jax.nn.sigmoid(gi[:, H:2 * H] + gh[:, H:2 * H])
        n = jnp.tanh(gi[:, 2 * H:] + r * gh[:, 2 * H:])
        return (1.0 - z) * n + z * h

    h0 = jnp.zeros((B, H), jnp.float32)
    h1 = jnp.zeros((B, H), jnp.float32)
    for t in range(T):
        h0 = cell(x[:, t, :], h0, w_ih0, w_hh0, b_ih0, b_hh0)
        h1 = cell(h0, h1, w_ih1, w_hh1, b_ih1, b_hh1)
    return jnp.maximum(h1 @ fc_w.T + fc_b, 0.0)


if __name__ == "__main__":
    key = jax.random.PRNGKey(0)
    kx, kp = jax.random.split(key)
    x = jax.random.normal(kx, (BATCH, SEQ, INPUT_SIZE), jnp.float32)
    params = init_params(kp)

    # Pack weights ONCE ("model load" time) — not per forward call.
    w_bf16, b_f32 = pack_params(params)
    w_bf16 = jax.block_until_ready(w_bf16)
    b_f32 = jax.block_until_ready(b_f32)

    out = jax.block_until_ready(gru_predictor_forward_jit(x, w_bf16, b_f32))
    ref = jax.block_until_ready(reference_forward(x, params))

    assert out.shape == (BATCH, OUTPUT_SIZE)
    # Tolerance loosened (bf16 MXU operands, per the performance review) vs. the f32 reference.
    assert jnp.allclose(out, ref, rtol=3e-2, atol=3e-2), (out, ref)
    print("KERNEL_OK")
</pallas_src>

<mosaic_0001>
module attributes {stable_mosaic.version = 11 : i64} {
  func.func @gru_predictor_kernel(%arg0: memref<64x16xbf16, #tpu.memory_space<vmem>>, %arg1: memref<208x192xbf16, #tpu.memory_space<vmem>>, %arg2: memref<8x192xf32, #tpu.memory_space<vmem>>, %arg3: memref<8x1xf32, #tpu.memory_space<vmem>>) attributes {dimension_semantics = [], scalar_prefetch = 0 : i64, scratch_operands = 0 : i64, tpu.core_type = #tpu.core_type<tc>} {
    %c0 = arith.constant 0 : index
    %c0_0 = arith.constant 0 : index
    %0 = vector.load %arg1[%c0, %c0_0] : memref<208x192xbf16, #tpu.memory_space<vmem>>, vector<16x192xbf16>
    %c16 = arith.constant 16 : index
    %c0_1 = arith.constant 0 : index
    %1 = vector.load %arg1[%c16, %c0_1] : memref<208x192xbf16, #tpu.memory_space<vmem>>, vector<64x192xbf16>
    %c80 = arith.constant 80 : index
    %c0_2 = arith.constant 0 : index
    %2 = vector.load %arg1[%c80, %c0_2] : memref<208x192xbf16, #tpu.memory_space<vmem>>, vector<64x192xbf16>
    %c144 = arith.constant 144 : index
    %c0_3 = arith.constant 0 : index
    %3 = vector.load %arg1[%c144, %c0_3] : memref<208x192xbf16, #tpu.memory_space<vmem>>, vector<64x192xbf16>
    %c0_4 = arith.constant 0 : index
    %c0_5 = arith.constant 0 : index
    %4 = vector.load %arg2[%c0_4, %c0_5] : memref<8x192xf32, #tpu.memory_space<vmem>>, vector<1x192xf32>
    %c2 = arith.constant 2 : index
    %c0_6 = arith.constant 0 : index
    %5 = vector.load %arg2[%c2, %c0_6] : memref<8x192xf32, #tpu.memory_space<vmem>>, vector<1x192xf32>
    %6 = vector.shape_cast %5 : vector<1x192xf32> to vector<1x192xf32>
    %7 = vector.broadcast %6 : vector<1x192xf32> to vector<8x192xf32>
    %c1 = arith.constant 1 : index
    %c0_7 = arith.constant 0 : index
    %8 = vector.load %arg2[%c1, %c0_7] : memref<8x192xf32, #tpu.memory_space<vmem>>, vector<1x64xf32>
    %9 = vector.shape_cast %8 : vector<1x64xf32> to vector<1x64xf32>
    %10 = vector.broadcast %9 : vector<1x64xf32> to vector<8x64xf32>
    %c3 = arith.constant 3 : index
    %c0_8 = arith.constant 0 : index
    %11 = vector.load %arg2[%c3, %c0_8] : memref<8x192xf32, #tpu.memory_space<vmem>>, vector<1x64xf32>
    %12 = vector.shape_cast %11 : vector<1x64xf32> to vector<1x64xf32>
    %13 = vector.broadcast %12 : vector<1x64xf32> to vector<8x64xf32>
    %c4 = arith.constant 4 : index
    %c0_9 = arith.constant 0 : index
    %14 = vector.load %arg2[%c4, %c0_9] : memref<8x192xf32, #tpu.memory_space<vmem>>, vector<1x1xf32>
    %c5 = arith.constant 5 : index
    %c0_10 = arith.constant 0 : index
    %15 = vector.load %arg2[%c5, %c0_10] : memref<8x192xf32, #tpu.memory_space<vmem>>, vector<1x64xf32>
    %c0_11 = arith.constant 0 : index
    %c0_12 = arith.constant 0 : index
    %16 = vector.load %arg0[%c0_11, %c0_12] : memref<64x16xbf16, #tpu.memory_space<vmem>>, vector<64x16xbf16>
    %cst = arith.constant dense<0.000000e+00> : vector<64x192xf32>
    %17 = tpu.matmul %16, %0, %cst {dimension_numbers = #tpu.dot_dimension_numbers<[1], [0], [0], [1], [0, 0, 1, 1], [], []>} : vector<64x16xbf16>, vector<16x192xbf16>, vector<64x192xf32> -> vector<64x192xf32>
    %18 = vector.broadcast %4 : vector<1x192xf32> to vector<64x192xf32>
    %19 = arith.addf %17, %18 : vector<64x192xf32>
    %20 = vector.extract_strided_slice %19 {offsets = [0, 0], sizes = [8, 192], strides = [1, 1]} : vector<64x192xf32> to vector<8x192xf32>
    %21 = vector.extract_strided_slice %20 {offsets = [0, 0], sizes = [8, 128], strides = [1, 1]} : vector<8x192xf32> to vector<8x128xf32>
    %22 = arith.negf %21 : vector<8x128xf32>
    %23 = math.exp %22 : vector<8x128xf32>
    %cst_13 = arith.constant 1.000000e+00 : f32
    %24 = vector.broadcast %cst_13 : f32 to vector<8x128xf32>
    %25 = arith.addf %24, %23 : vector<8x128xf32>
    %26 = arith.divf %24, %25 : vector<8x128xf32>
    %27 = vector.extract_strided_slice %26 {offsets = [0, 0], sizes = [8, 64], strides = [1, 1]} : vector<8x128xf32> to vector<8x64xf32>
    %28 = vector.extract_strided_slice %26 {offsets = [0, 64], sizes = [8, 64], strides = [1, 1]} : vector<8x128xf32> to vector<8x64xf32>
    %29 = vector.extract_strided_slice %20 {offsets = [0, 128], sizes = [8, 64], strides = [1, 1]} : vector<8x192xf32> to vector<8x64xf32>
    %30 = arith.mulf %27, %10 : vector<8x64xf32>
    %31 = arith.addf %29, %30 : vector<8x64xf32>
    %32 = math.tanh %31 : vector<8x64xf32>
    %33 = arith.mulf %28, %32 : vector<8x64xf32>
    %34 = arith.subf %32, %33 : vector<8x64xf32>
    %35 = arith.truncf %34 : vector<8x64xf32> to vector<8x64xbf16>
    %cst_14 = arith.constant dense<0.000000e+00> : vector<8x192xf32>
    %36 = tpu.matmul %35, %2, %cst_14 {dimension_numbers = #tpu.dot_dimension_numbers<[1], [0], [0], [1], [0, 0, 1, 1], [], []>} : vector<8x64xbf16>, vector<64x192xbf16>, vector<8x192xf32> -> vector<8x192xf32>
    %37 = arith.addf %36, %7 : vector<8x192xf32>
    %38 = vector.extract_strided_slice %37 {offsets = [0, 0], sizes = [8, 128], strides = [1, 1]} : vector<8x192xf32> to vector<8x128xf32>
    %39 = arith.negf %38 : vector<8x128xf32>
    %40 = math.exp %39 : vector<8x128xf32>
    %cst_15 = arith.constant 1.000000e+00 : f32
    %41 = vector.broadcast %cst_15 : f32 to vector<8x128xf32>
    %42 = arith.addf %41, %40 : vector<8x128xf32>
    %43 = arith.divf %41, %42 : vector<8x128xf32>
    %44 = vector.extract_strided_slice %43 {offsets = [0, 0], sizes = [8, 64], strides = [1, 1]} : vector<8x128xf32> to vector<8x64xf32>
    %45 = vector.extract_strided_slice %43 {offsets = [0, 64], sizes = [8, 64], strides = [1, 1]} : vector<8x128xf32> to vector<8x64xf32>
    %46 = vector.extract_strided_slice %37 {offsets = [0, 128], sizes = [8, 64], strides = [1, 1]} : vector<8x192xf32> to vector<8x64xf32>
    %47 = arith.mulf %44, %13 : vector<8x64xf32>
    %48 = arith.addf %46, %47 : vector<8x64xf32>
    %49 = math.tanh %48 : vector<8x64xf32>
    %50 = arith.mulf %45, %49 : vector<8x64xf32>
    %51 = arith.subf %49, %50 : vector<8x64xf32>
    %52 = vector.extract_strided_slice %19 {offsets = [8, 0], sizes = [8, 192], strides = [1, 1]} : vector<64x192xf32> to vector<8x192xf32>
    %53 = arith.truncf %34 : vector<8x64xf32> to vector<8x64xbf16>
    %cst_16 = arith.constant dense<0.000000e+00> : vector<8x192xf32>
    %54 = tpu.matmul %53, %1, %cst_16 {dimension_numbers = #tpu.dot_dimension_numbers<[1], [0], [0], [1], [0, 0, 1, 1], [], []>} : vector<8x64xbf16>, vector<64x192xbf16>, vector<8x192xf32> -> vector<8x192xf32>
    %55 = vector.extract_strided_slice %52 {offsets = [0, 0], sizes = [8, 128], strides = [1, 1]} : vector<8x192xf32> to vector<8x128xf32>
    %56 = vector.extract_strided_slice %54 {offsets = [0, 0], sizes = [8, 128], strides = [1, 1]} : vector<8x192xf32> to vector<8x128xf32>
    %57 = arith.addf %55, %56 : vector<8x128xf32>
    %58 = vector.extract_strided_slice %54 {offsets = [0, 128], sizes = [8, 64], strides = [1, 1]} : vector<8x192xf32> to vector<8x64xf32>
    %59 = arith.addf %58, %10 : vector<8x64xf32>
    %60 = arith.negf %57 : vector<8x128xf32>
    %61 = math.exp %60 : vector<8x128xf32>
    %cst_17 = arith.constant 1.000000e+00 : f32
    %62 = vector.broadcast %cst_17 : f32 to vector<8x128xf32>
    %63 = arith.addf %62, %61 : vector<8x128xf32>
    %64 = arith.divf %62, %63 : vector<8x128xf32>
    %65 = vector.extract_strided_slice %64 {offsets = [0, 0], sizes = [8, 64], strides = [1, 1]} : vector<8x128xf32> to vector<8x64xf32>
    %66 = vector.extract_strided_slice %64 {offsets = [0, 64], sizes = [8, 64], strides = [1, 1]} : vector<8x128xf32> to vector<8x64xf32>
    %67 = vector.extract_strided_slice %52 {offsets = [0, 128], sizes = [8, 64], strides = [1, 1]} : vector<8x192xf32> to vector<8x64xf32>
    %68 = arith.mulf %65, %59 : vector<8x64xf32>
    %69 = arith.addf %67, %68 : vector<8x64xf32>
    %70 = math.tanh %69 : vector<8x64xf32>
    %71 = arith.subf %34, %70 : vector<8x64xf32>
    %72 = arith.mulf %66, %71 : vector<8x64xf32>
    %73 = arith.addf %70, %72 : vector<8x64xf32>
    %74 = arith.truncf %73 : vector<8x64xf32> to vector<8x64xbf16>
    %cst_18 = arith.constant dense<0.000000e+00> : vector<8x192xf32>
    %75 = tpu.matmul %74, %2, %cst_18 {dimension_numbers = #tpu.dot_dimension_numbers<[1], [0], [0], [1], [0, 0, 1, 1], [], []>} : vector<8x64xbf16>, vector<64x192xbf16>, vector<8x192xf32> -> vector<8x192xf32>
    %76 = arith.addf %75, %7 : vector<8x192xf32>
    %77 = arith.truncf %51 : vector<8x64xf32> to vector<8x64xbf16>
    %cst_19 = arith.constant dense<0.000000e+00> : vector<8x192xf32>
    %78 = tpu.matmul %77, %3, %cst_19 {dimension_numbers = #tpu.dot_dimension_numbers<[1], [0], [0], [1], [0, 0, 1, 1], [], []>} : vector<8x64xbf16>, vector<64x192xbf16>, vector<8x192xf32> -> vector<8x192xf32>
    %79 = vector.extract_strided_slice %76 {offsets = [0, 0], sizes = [8, 128], strides = [1, 1]} : vector<8x192xf32> to vector<8x128xf32>
    %80 = vector.extract_strided_slice %78 {offsets = [0, 0], sizes = [8, 128], strides = [1, 1]} : vector<8x192xf32> to vector<8x128xf32>
    %81 = arith.addf %79, %80 : vector<8x128xf32>
    %82 = vector.extract_strided_slice %78 {offsets = [0, 128], sizes = [8, 64], strides = [1, 1]} : vector<8x192xf32> to vector<8x64xf32>
    %83 = arith.addf %82, %13 : vector<8x64xf32>
    %84 = arith.negf %81 : vector<8x128xf32>
    %85 = math.exp %84 : vector<8x128xf32>
    %cst_20 = arith.constant 1.000000e+00 : f32
    %86 = vector.broadcast %cst_20 : f32 to vector<8x128xf32>
    %87 = arith.addf %86, %85 : vector<8x128xf32>
    %88 = arith.divf %86, %87 : vector<8x128xf32>
    %89 = vector.extract_strided_slice %88 {offsets = [0, 0], sizes = [8, 64], strides = [1, 1]} : vector<8x128xf32> to vector<8x64xf32>
    %90 = vector.extract_strided_slice %88 {offsets = [0, 64], sizes = [8, 64], strides = [1, 1]} : vector<8x128xf32> to vector<8x64xf32>
    %91 = vector.extract_strided_slice %76 {offsets = [0, 128], sizes = [8, 64], strides = [1, 1]} : vector<8x192xf32> to vector<8x64xf32>
    %92 = arith.mulf %89, %83 : vector<8x64xf32>
    %93 = arith.addf %91, %92 : vector<8x64xf32>
    %94 = math.tanh %93 : vector<8x64xf32>
    %95 = arith.subf %51, %94 : vector<8x64xf32>
    %96 = arith.mulf %90, %95 : vector<8x64xf32>
    %97 = arith.addf %94, %96 : vector<8x64xf32>
    %98 = vector.extract_strided_slice %19 {offsets = [16, 0], sizes = [8, 192], strides = [1, 1]} : vector<64x192xf32> to vector<8x192xf32>
    %99 = arith.truncf %73 : vector<8x64xf32> to vector<8x64xbf16>
    %cst_21 = arith.constant dense<0.000000e+00> : vector<8x192xf32>
    %100 = tpu.matmul %99, %1, %cst_21 {dimension_numbers = #tpu.dot_dimension_numbers<[1], [0], [0], [1], [0, 0, 1, 1], [], []>} : vector<8x64xbf16>, vector<64x192xbf16>, vector<8x192xf32> -> vector<8x192xf32>
    %101 = vector.extract_strided_slice %98 {offsets = [0, 0], sizes = [8, 128], strides = [1, 1]} : vector<8x192xf32> to vector<8x128xf32>
    %102 = vector.extract_strided_slice %100 {offsets = [0, 0], sizes = [8, 128], strides = [1, 1]} : vector<8x192xf32> to vector<8x128xf32>
    %103 = arith.addf %101, %102 : vector<8x128xf32>
    %104 = vector.extract_strided_slice %100 {offsets = [0, 128], sizes = [8, 64], strides = [1, 1]} : vector<8x192xf32> to vector<8x64xf32>
    %105 = arith.addf %104, %10 : vector<8x64xf32>
    %106 = arith.negf %103 : vector<8x128xf32>
    %107 = math.exp %106 : vector<8x128xf32>
    %cst_22 = arith.constant 1.000000e+00 : f32
    %108 = vector.broadcast %cst_22 : f32 to vector<8x128xf32>
    %109 = arith.addf %108, %107 : vector<8x128xf32>
    %110 = arith.divf %108, %109 : vector<8x128xf32>
    %111 = vector.extract_strided_slice %110 {offsets = [0, 0], sizes = [8, 64], strides = [1, 1]} : vector<8x128xf32> to vector<8x64xf32>
    %112 = vector.extract_strided_slice %110 {offsets = [0, 64], sizes = [8, 64], strides = [1, 1]} : vector<8x128xf32> to vector<8x64xf32>
    %113 = vector.extract_strided_slice %98 {offsets = [0, 128], sizes = [8, 64], strides = [1, 1]} : vector<8x192xf32> to vector<8x64xf32>
    %114 = arith.mulf %111, %105 : vector<8x64xf32>
    %115 = arith.addf %113, %114 : vector<8x64xf32>
    %116 = math.tanh %115 : vector<8x64xf32>
    %117 = arith.subf %73, %116 : vector<8x64xf32>
    %118 = arith.mulf %112, %117 : vector<8x64xf32>
    %119 = arith.addf %116, %118 : vector<8x64xf32>
    %120 = arith.truncf %119 : vector<8x64xf32> to vector<8x64xbf16>
    %cst_23 = arith.constant dense<0.000000e+00> : vector<8x192xf32>
    %121 = tpu.matmul %120, %2, %cst_23 {dimension_numbers = #tpu.dot_dimension_numbers<[1], [0], [0], [1], [0, 0, 1, 1], [], []>} : vector<8x64xbf16>, vector<64x192xbf16>, vector<8x192xf32> -> vector<8x192xf32>
    %122 = arith.addf %121, %7 : vector<8x192xf32>
    %123 = arith.truncf %97 : vector<8x64xf32> to vector<8x64xbf16>
    %cst_24 = arith.constant dense<0.000000e+00> : vector<8x192xf32>
    %124 = tpu.matmul %123, %3, %cst_24 {dimension_numbers = #tpu.dot_dimension_numbers<[1], [0], [0], [1], [0, 0, 1, 1], [], []>} : vector<8x64xbf16>, vector<64x192xbf16>, vector<8x192xf32> -> vector<8x192xf32>
    %125 = vector.extract_strided_slice %122 {offsets = [0, 0], sizes = [8, 128], strides = [1, 1]} : vector<8x192xf32> to vector<8x128xf32>
    %126 = vector.extract_strided_slice %124 {offsets = [0, 0], sizes = [8, 128], strides = [1, 1]} : vector<8x192xf32> to vector<8x128xf32>
    %127 = arith.addf %125, %126 : vector<8x128xf32>
    %128 = vector.extract_strided_slice %124 {offsets = [0, 128], sizes = [8, 64], strides = [1, 1]} : vector<8x192xf32> to vector<8x64xf32>
    %129 = arith.addf %128, %13 : vector<8x64xf32>
    %130 = arith.negf %127 : vector<8x128xf32>
    %131 = math.exp %130 : vector<8x128xf32>
    %cst_25 = arith.constant 1.000000e+00 : f32
    %132 = vector.broadcast %cst_25 : f32 to vector<8x128xf32>
    %133 = arith.addf %132, %131 : vector<8x128xf32>
    %134 = arith.divf %132, %133 : vector<8x128xf32>
    %135 = vector.extract_strided_slice %134 {offsets = [0, 0], sizes = [8, 64], strides = [1, 1]} : vector<8x128xf32> to vector<8x64xf32>
    %136 = vector.extract_strided_slice %134 {offsets = [0, 64], sizes = [8, 64], strides = [1, 1]} : vector<8x128xf32> to vector<8x64xf32>
    %137 = vector.extract_strided_slice %122 {offsets = [0, 128], sizes = [8, 64], strides = [1, 1]} : vector<8x192xf32> to vector<8x64xf32>
    %138 = arith.mulf %135, %129 : vector<8x64xf32>
    %139 = arith.addf %137, %138 : vector<8x64xf32>
    %140 = math.tanh %139 : vector<8x64xf32>
    %141 = arith.subf %97, %140 : vector<8x64xf32>
    %142 = arith.mulf %136, %141 : vector<8x64xf32>
    %143 = arith.addf %140, %142 : vector<8x64xf32>
    %144 = vector.extract_strided_slice %19 {offsets = [24, 0], sizes = [8, 192], strides = [1, 1]} : vector<64x192xf32> to vector<8x192xf32>
    %145 = arith.truncf %119 : vector<8x64xf32> to vector<8x64xbf16>
    %cst_26 = arith.constant dense<0.000000e+00> : vector<8x192xf32>
    %146 = tpu.matmul %145, %1, %cst_26 {dimension_numbers = #tpu.dot_dimension_numbers<[1], [0], [0], [1], [0, 0, 1, 1], [], []>} : vector<8x64xbf16>, vector<64x192xbf16>, vector<8x192xf32> -> vector<8x192xf32>
    %147 = vector.extract_strided_slice %144 {offsets = [0, 0], sizes = [8, 128], strides = [1, 1]} : vector<8x192xf32> to vector<8x128xf32>
    %148 = vector.extract_strided_slice %146 {offsets = [0, 0], sizes = [8, 128], strides = [1, 1]} : vector<8x192xf32> to vector<8x128xf32>
    %149 = arith.addf %147, %148 : vector<8x128xf32>
    %150 = vector.extract_strided_slice %146 {offsets = [0, 128], sizes = [8, 64], strides = [1, 1]} : vector<8x192xf32> to vector<8x64xf32>
    %151 = arith.addf %150, %10 : vector<8x64xf32>
    %152 = arith.negf %149 : vector<8x128xf32>
    %153 = math.exp %152 : vector<8x128xf32>
    %cst_27 = arith.constant 1.000000e+00 : f32
    %154 = vector.broadcast %cst_27 : f32 to vector<8x128xf32>
    %155 = arith.addf %154, %153 : vector<8x128xf32>
    %156 = arith.divf %154, %155 : vector<8x128xf32>
    %157 = vector.extract_strided_slice %156 {offsets = [0, 0], sizes = [8, 64], strides = [1, 1]} : vector<8x128xf32> to vector<8x64xf32>
    %158 = vector.extract_strided_slice %156 {offsets = [0, 64], sizes = [8, 64], strides = [1, 1]} : vector<8x128xf32> to vector<8x64xf32>
    %159 = vector.extract_strided_slice %144 {offsets = [0, 128], sizes = [8, 64], strides = [1, 1]} : vector<8x192xf32> to vector<8x64xf32>
    %160 = arith.mulf %157, %151 : vector<8x64xf32>
    %161 = arith.addf %159, %160 : vector<8x64xf32>
    %162 = math.tanh %161 : vector<8x64xf32>
    %163 = arith.subf %119, %162 : vector<8x64xf32>
    %164 = arith.mulf %158, %163 : vector<8x64xf32>
    %165 = arith.addf %162, %164 : vector<8x64xf32>
    %166 = arith.truncf %165 : vector<8x64xf32> to vector<8x64xbf16>
    %cst_28 = arith.constant dense<0.000000e+00> : vector<8x192xf32>
    %167 = tpu.matmul %166, %2, %cst_28 {dimension_numbers = #tpu.dot_dimension_numbers<[1], [0], [0], [1], [0, 0, 1, 1], [], []>} : vector<8x64xbf16>, vector<64x192xbf16>, vector<8x192xf32> -> vector<8x192xf32>
    %168 = arith.addf %167, %7 : vector<8x192xf32>
    %169 = arith.truncf %143 : vector<8x64xf32> to vector<8x64xbf16>
    %cst_29 = arith.constant dense<0.000000e+00> : vector<8x192xf32>
    %170 = tpu.matmul %169, %3, %cst_29 {dimension_numbers = #tpu.dot_dimension_numbers<[1], [0], [0], [1], [0, 0, 1, 1], [], []>} : vector<8x64xbf16>, vector<64x192xbf16>, vector<8x192xf32> -> vector<8x192xf32>
    %171 = vector.extract_strided_slice %168 {offsets = [0, 0], sizes = [8, 128], strides = [1, 1]} : vector<8x192xf32> to vector<8x128xf32>
    %172 = vector.extract_strided_slice %170 {offsets = [0, 0], sizes = [8, 128], strides = [1, 1]} : vector<8x192xf32> to vector<8x128xf32>
    %173 = arith.addf %171, %172 : vector<8x128xf32>
    %174 = vector.extract_strided_slice %170 {offsets = [0, 128], sizes = [8, 64], strides = [1, 1]} : vector<8x192xf32> to vector<8x64xf32>
    %175 = arith.addf %174, %13 : vector<8x64xf32>
    %176 = arith.negf %173 : vector<8x128xf32>
    %177 = math.exp %176 : vector<8x128xf32>
    %cst_30 = arith.constant 1.000000e+00 : f32
    %178 = vector.broadcast %cst_30 : f32 to vector<8x128xf32>
    %179 = arith.addf %178, %177 : vector<8x128xf32>
    %180 = arith.divf %178, %179 : vector<8x128xf32>
    %181 = vector.extract_strided_slice %180 {offsets = [0, 0], sizes = [8, 64], strides = [1, 1]} : vector<8x128xf32> to vector<8x64xf32>
    %182 = vector.extract_strided_slice %180 {offsets = [0, 64], sizes = [8, 64], strides = [1, 1]} : vector<8x128xf32> to vector<8x64xf32>
    %183 = vector.extract_strided_slice %168 {offsets = [0, 128], sizes = [8, 64], strides = [1, 1]} : vector<8x192xf32> to vector<8x64xf32>
    %184 = arith.mulf %181, %175 : vector<8x64xf32>
    %185 = arith.addf %183, %184 : vector<8x64xf32>
    %186 = math.tanh %185 : vector<8x64xf32>
    %187 = arith.subf %143, %186 : vector<8x64xf32>
    %188 = arith.mulf %182, %187 : vector<8x64xf32>
    %189 = arith.addf %186, %188 : vector<8x64xf32>
    %190 = vector.extract_strided_slice %19 {offsets = [32, 0], sizes = [8, 192], strides = [1, 1]} : vector<64x192xf32> to vector<8x192xf32>
    %191 = arith.truncf %165 : vector<8x64xf32> to vector<8x64xbf16>
    %cst_31 = arith.constant dense<0.000000e+00> : vector<8x192xf32>
    %192 = tpu.matmul %191, %1, %cst_31 {dimension_numbers = #tpu.dot_dimension_numbers<[1], [0], [0], [1], [0, 0, 1, 1], [], []>} : vector<8x64xbf16>, vector<64x192xbf16>, vector<8x192xf32> -> vector<8x192xf32>
    %193 = vector.extract_strided_slice %190 {offsets = [0, 0], sizes = [8, 128], strides = [1, 1]} : vector<8x192xf32> to vector<8x128xf32>
    %194 = vector.extract_strided_slice %192 {offsets = [0, 0], sizes = [8, 128], strides = [1, 1]} : vector<8x192xf32> to vector<8x128xf32>
    %195 = arith.addf %193, %194 : vector<8x128xf32>
    %196 = vector.extract_strided_slice %192 {offsets = [0, 128], sizes = [8, 64], strides = [1, 1]} : vector<8x192xf32> to vector<8x64xf32>
    %197 = arith.addf %196, %10 : vector<8x64xf32>
    %198 = arith.negf %195 : vector<8x128xf32>
    %199 = math.exp %198 : vector<8x128xf32>
    %cst_32 = arith.constant 1.000000e+00 : f32
    %200 = vector.broadcast %cst_32 : f32 to vector<8x128xf32>
    %201 = arith.addf %200, %199 : vector<8x128xf32>
    %202 = arith.divf %200, %201 : vector<8x128xf32>
    %203 = vector.extract_strided_slice %202 {offsets = [0, 0], sizes = [8, 64], strides = [1, 1]} : vector<8x128xf32> to vector<8x64xf32>
    %204 = vector.extract_strided_slice %202 {offsets = [0, 64], sizes = [8, 64], strides = [1, 1]} : vector<8x128xf32> to vector<8x64xf32>
    %205 = vector.extract_strided_slice %190 {offsets = [0, 128], sizes = [8, 64], strides = [1, 1]} : vector<8x192xf32> to vector<8x64xf32>
    %206 = arith.mulf %203, %197 : vector<8x64xf32>
    %207 = arith.addf %205, %206 : vector<8x64xf32>
    %208 = math.tanh %207 : vector<8x64xf32>
    %209 = arith.subf %165, %208 : vector<8x64xf32>
    %210 = arith.mulf %204, %209 : vector<8x64xf32>
    %211 = arith.addf %208, %210 : vector<8x64xf32>
    %212 = arith.truncf %211 : vector<8x64xf32> to vector<8x64xbf16>
    %cst_33 = arith.constant dense<0.000000e+00> : vector<8x192xf32>
    %213 = tpu.matmul %212, %2, %cst_33 {dimension_numbers = #tpu.dot_dimension_numbers<[1], [0], [0], [1], [0, 0, 1, 1], [], []>} : vector<8x64xbf16>, vector<64x192xbf16>, vector<8x192xf32> -> vector<8x192xf32>
    %214 = arith.addf %213, %7 : vector<8x192xf32>
    %215 = arith.truncf %189 : vector<8x64xf32> to vector<8x64xbf16>
    %cst_34 = arith.constant dense<0.000000e+00> : vector<8x192xf32>
    %216 = tpu.matmul %215, %3, %cst_34 {dimension_numbers = #tpu.dot_dimension_numbers<[1], [0], [0], [1], [0, 0, 1, 1], [], []>} : vector<8x64xbf16>, vector<64x192xbf16>, vector<8x192xf32> -> vector<8x192xf32>
    %217 = vector.extract_strided_slice %214 {offsets = [0, 0], sizes = [8, 128], strides = [1, 1]} : vector<8x192xf32> to vector<8x128xf32>
    %218 = vector.extract_strided_slice %216 {offsets = [0, 0], sizes = [8, 128], strides = [1, 1]} : vector<8x192xf32> to vector<8x128xf32>
    %219 = arith.addf %217, %218 : vector<8x128xf32>
    %220 = vector.extract_strided_slice %216 {offsets = [0, 128], sizes = [8, 64], strides = [1, 1]} : vector<8x192xf32> to vector<8x64xf32>
    %221 = arith.addf %220, %13 : vector<8x64xf32>
    %222 = arith.negf %219 : vector<8x128xf32>
    %223 = math.exp %222 : vector<8x128xf32>
    %cst_35 = arith.constant 1.000000e+00 : f32
    %224 = vector.broadcast %cst_35 : f32 to vector<8x128xf32>
    %225 = arith.addf %224, %223 : vector<8x128xf32>
    %226 = arith.divf %224, %225 : vector<8x128xf32>
    %227 = vector.extract_strided_slice %226 {offsets = [0, 0], sizes = [8, 64], strides = [1, 1]} : vector<8x128xf32> to vector<8x64xf32>
    %228 = vector.extract_strided_slice %226 {offsets = [0, 64], sizes = [8, 64], strides = [1, 1]} : vector<8x128xf32> to vector<8x64xf32>
    %229 = vector.extract_strided_slice %214 {offsets = [0, 128], sizes = [8, 64], strides = [1, 1]} : vector<8x192xf32> to vector<8x64xf32>
    %230 = arith.mulf %227, %221 : vector<8x64xf32>
    %231 = arith.addf %229, %230 : vector<8x64xf32>
    %232 = math.tanh %231 : vector<8x64xf32>
    %233 = arith.subf %189, %232 : vector<8x64xf32>
    %234 = arith.mulf %228, %233 : vector<8x64xf32>
    %235 = arith.addf %232, %234 : vector<8x64xf32>
    %236 = vector.extract_strided_slice %19 {offsets = [40, 0], sizes = [8, 192], strides = [1, 1]} : vector<64x192xf32> to vector<8x192xf32>
    %237 = arith.truncf %211 : vector<8x64xf32> to vector<8x64xbf16>
    %cst_36 = arith.constant dense<0.000000e+00> : vector<8x192xf32>
    %238 = tpu.matmul %237, %1, %cst_36 {dimension_numbers = #tpu.dot_dimension_numbers<[1], [0], [0], [1], [0, 0, 1, 1], [], []>} : vector<8x64xbf16>, vector<64x192xbf16>, vector<8x192xf32> -> vector<8x192xf32>
    %239 = vector.extract_strided_slice %236 {offsets = [0, 0], sizes = [8, 128], strides = [1, 1]} : vector<8x192xf32> to vector<8x128xf32>
    %240 = vector.extract_strided_slice %238 {offsets = [0, 0], sizes = [8, 128], strides = [1, 1]} : vector<8x192xf32> to vector<8x128xf32>
    %241 = arith.addf %239, %240 : vector<8x128xf32>
    %242 = vector.extract_strided_slice %238 {offsets = [0, 128], sizes = [8, 64], strides = [1, 1]} : vector<8x192xf32> to vector<8x64xf32>
    %243 = arith.addf %242, %10 : vector<8x64xf32>
    %244 = arith.negf %241 : vector<8x128xf32>
    %245 = math.exp %244 : vector<8x128xf32>
    %cst_37 = arith.constant 1.000000e+00 : f32
    %246 = vector.broadcast %cst_37 : f32 to vector<8x128xf32>
    %247 = arith.addf %246, %245 : vector<8x128xf32>
    %248 = arith.divf %246, %247 : vector<8x128xf32>
    %249 = vector.extract_strided_slice %248 {offsets = [0, 0], sizes = [8, 64], strides = [1, 1]} : vector<8x128xf32> to vector<8x64xf32>
    %250 = vector.extract_strided_slice %248 {offsets = [0, 64], sizes = [8, 64], strides = [1, 1]} : vector<8x128xf32> to vector<8x64xf32>
    %251 = vector.extract_strided_slice %236 {offsets = [0, 128], sizes = [8, 64], strides = [1, 1]} : vector<8x192xf32> to vector<8x64xf32>
    %252 = arith.mulf %249, %243 : vector<8x64xf32>
    %253 = arith.addf %251, %252 : vector<8x64xf32>
    %254 = math.tanh %253 : vector<8x64xf32>
    %255 = arith.subf %211, %254 : vector<8x64xf32>
    %256 = arith.mulf %250, %255 : vector<8x64xf32>
    %257 = arith.addf %254, %256 : vector<8x64xf32>
    %258 = arith.truncf %257 : vector<8x64xf32> to vector<8x64xbf16>
    %cst_38 = arith.constant dense<0.000000e+00> : vector<8x192xf32>
    %259 = tpu.matmul %258, %2, %cst_38 {dimension_numbers = #tpu.dot_dimension_numbers<[1], [0], [0], [1], [0, 0, 1, 1], [], []>} : vector<8x64xbf16>, vector<64x192xbf16>, vector<8x192xf32> -> vector<8x192xf32>
    %260 = arith.addf %259, %7 : vector<8x192xf32>
    %261 = arith.truncf %235 : vector<8x64xf32> to vector<8x64xbf16>
    %cst_39 = arith.constant dense<0.000000e+00> : vector<8x192xf32>
    %262 = tpu.matmul %261, %3, %cst_39 {dimension_numbers = #tpu.dot_dimension_numbers<[1], [0], [0], [1], [0, 0, 1, 1], [], []>} : vector<8x64xbf16>, vector<64x192xbf16>, vector<8x192xf32> -> vector<8x192xf32>
    %263 = vector.extract_strided_slice %260 {offsets = [0, 0], sizes = [8, 128], strides = [1, 1]} : vector<8x192xf32> to vector<8x128xf32>
    %264 = vector.extract_strided_slice %262 {offsets = [0, 0], sizes = [8, 128], strides = [1, 1]} : vector<8x192xf32> to vector<8x128xf32>
    %265 = arith.addf %263, %264 : vector<8x128xf32>
    %266 = vector.extract_strided_slice %262 {offsets = [0, 128], sizes = [8, 64], strides = [1, 1]} : vector<8x192xf32> to vector<8x64xf32>
    %267 = arith.addf %266, %13 : vector<8x64xf32>
    %268 = arith.negf %265 : vector<8x128xf32>
    %269 = math.exp %268 : vector<8x128xf32>
    %cst_40 = arith.constant 1.000000e+00 : f32
    %270 = vector.broadcast %cst_40 : f32 to vector<8x128xf32>
    %271 = arith.addf %270, %269 : vector<8x128xf32>
    %272 = arith.divf %270, %271 : vector<8x128xf32>
    %273 = vector.extract_strided_slice %272 {offsets = [0, 0], sizes = [8, 64], strides = [1, 1]} : vector<8x128xf32> to vector<8x64xf32>
    %274 = vector.extract_strided_slice %272 {offsets = [0, 64], sizes = [8, 64], strides = [1, 1]} : vector<8x128xf32> to vector<8x64xf32>
    %275 = vector.extract_strided_slice %260 {offsets = [0, 128], sizes = [8, 64], strides = [1, 1]} : vector<8x192xf32> to vector<8x64xf32>
    %276 = arith.mulf %273, %267 : vector<8x64xf32>
    %277 = arith.addf %275, %276 : vector<8x64xf32>
    %278 = math.tanh %277 : vector<8x64xf32>
    %279 = arith.subf %235, %278 : vector<8x64xf32>
    %280 = arith.mulf %274, %279 : vector<8x64xf32>
    %281 = arith.addf %278, %280 : vector<8x64xf32>
    %282 = vector.extract_strided_slice %19 {offsets = [48, 0], sizes = [8, 192], strides = [1, 1]} : vector<64x192xf32> to vector<8x192xf32>
    %283 = arith.truncf %257 : vector<8x64xf32> to vector<8x64xbf16>
    %cst_41 = arith.constant dense<0.000000e+00> : vector<8x192xf32>
    %284 = tpu.matmul %283, %1, %cst_41 {dimension_numbers = #tpu.dot_dimension_numbers<[1], [0], [0], [1], [0, 0, 1, 1], [], []>} : vector<8x64xbf16>, vector<64x192xbf16>, vector<8x192xf32> -> vector<8x192xf32>
    %285 = vector.extract_strided_slice %282 {offsets = [0, 0], sizes = [8, 128], strides = [1, 1]} : vector<8x192xf32> to vector<8x128xf32>
    %286 = vector.extract_strided_slice %284 {offsets = [0, 0], sizes = [8, 128], strides = [1, 1]} : vector<8x192xf32> to vector<8x128xf32>
    %287 = arith.addf %285, %286 : vector<8x128xf32>
    %288 = vector.extract_strided_slice %284 {offsets = [0, 128], sizes = [8, 64], strides = [1, 1]} : vector<8x192xf32> to vector<8x64xf32>
    %289 = arith.addf %288, %10 : vector<8x64xf32>
    %290 = arith.negf %287 : vector<8x128xf32>
    %291 = math.exp %290 : vector<8x128xf32>
    %cst_42 = arith.constant 1.000000e+00 : f32
    %292 = vector.broadcast %cst_42 : f32 to vector<8x128xf32>
    %293 = arith.addf %292, %291 : vector<8x128xf32>
    %294 = arith.divf %292, %293 : vector<8x128xf32>
    %295 = vector.extract_strided_slice %294 {offsets = [0, 0], sizes = [8, 64], strides = [1, 1]} : vector<8x128xf32> to vector<8x64xf32>
    %296 = vector.extract_strided_slice %294 {offsets = [0, 64], sizes = [8, 64], strides = [1, 1]} : vector<8x128xf32> to vector<8x64xf32>
    %297 = vector.extract_strided_slice %282 {offsets = [0, 128], sizes = [8, 64], strides = [1, 1]} : vector<8x192xf32> to vector<8x64xf32>
    %298 = arith.mulf %295, %289 : vector<8x64xf32>
    %299 = arith.addf %297, %298 : vector<8x64xf32>
    %300 = math.tanh %299 : vector<8x64xf32>
    %301 = arith.subf %257, %300 : vector<8x64xf32>
    %302 = arith.mulf %296, %301 : vector<8x64xf32>
    %303 = arith.addf %300, %302 : vector<8x64xf32>
    %304 = arith.truncf %303 : vector<8x64xf32> to vector<8x64xbf16>
    %cst_43 = arith.constant dense<0.000000e+00> : vector<8x192xf32>
    %305 = tpu.matmul %304, %2, %cst_43 {dimension_numbers = #tpu.dot_dimension_numbers<[1], [0], [0], [1], [0, 0, 1, 1], [], []>} : vector<8x64xbf16>, vector<64x192xbf16>, vector<8x192xf32> -> vector<8x192xf32>
    %306 = arith.addf %305, %7 : vector<8x192xf32>
    %307 = arith.truncf %281 : vector<8x64xf32> to vector<8x64xbf16>
    %cst_44 = arith.constant dense<0.000000e+00> : vector<8x192xf32>
    %308 = tpu.matmul %307, %3, %cst_44 {dimension_numbers = #tpu.dot_dimension_numbers<[1], [0], [0], [1], [0, 0, 1, 1], [], []>} : vector<8x64xbf16>, vector<64x192xbf16>, vector<8x192xf32> -> vector<8x192xf32>
    %309 = vector.extract_strided_slice %306 {offsets = [0, 0], sizes = [8, 128], strides = [1, 1]} : vector<8x192xf32> to vector<8x128xf32>
    %310 = vector.extract_strided_slice %308 {offsets = [0, 0], sizes = [8, 128], strides = [1, 1]} : vector<8x192xf32> to vector<8x128xf32>
    %311 = arith.addf %309, %310 : vector<8x128xf32>
    %312 = vector.extract_strided_slice %308 {offsets = [0, 128], sizes = [8, 64], strides = [1, 1]} : vector<8x192xf32> to vector<8x64xf32>
    %313 = arith.addf %312, %13 : vector<8x64xf32>
    %314 = arith.negf %311 : vector<8x128xf32>
    %315 = math.exp %314 : vector<8x128xf32>
    %cst_45 = arith.constant 1.000000e+00 : f32
    %316 = vector.broadcast %cst_45 : f32 to vector<8x128xf32>
    %317 = arith.addf %316, %315 : vector<8x128xf32>
    %318 = arith.divf %316, %317 : vector<8x128xf32>
    %319 = vector.extract_strided_slice %318 {offsets = [0, 0], sizes = [8, 64], strides = [1, 1]} : vector<8x128xf32> to vector<8x64xf32>
    %320 = vector.extract_strided_slice %318 {offsets = [0, 64], sizes = [8, 64], strides = [1, 1]} : vector<8x128xf32> to vector<8x64xf32>
    %321 = vector.extract_strided_slice %306 {offsets = [0, 128], sizes = [8, 64], strides = [1, 1]} : vector<8x192xf32> to vector<8x64xf32>
    %322 = arith.mulf %319, %313 : vector<8x64xf32>
    %323 = arith.addf %321, %322 : vector<8x64xf32>
    %324 = math.tanh %323 : vector<8x64xf32>
    %325 = arith.subf %281, %324 : vector<8x64xf32>
    %326 = arith.mulf %320, %325 : vector<8x64xf32>
    %327 = arith.addf %324, %326 : vector<8x64xf32>
    %328 = vector.extract_strided_slice %19 {offsets = [56, 0], sizes = [8, 192], strides = [1, 1]} : vector<64x192xf32> to vector<8x192xf32>
    %329 = arith.truncf %303 : vector<8x64xf32> to vector<8x64xbf16>
    %cst_46 = arith.constant dense<0.000000e+00> : vector<8x192xf32>
    %330 = tpu.matmul %329, %1, %cst_46 {dimension_numbers = #tpu.dot_dimension_numbers<[1], [0], [0], [1], [0, 0, 1, 1], [], []>} : vector<8x64xbf16>, vector<64x192xbf16>, vector<8x192xf32> -> vector<8x192xf32>
    %331 = vector.extract_strided_slice %328 {offsets = [0, 0], sizes = [8, 128], strides = [1, 1]} : vector<8x192xf32> to vector<8x128xf32>
    %332 = vector.extract_strided_slice %330 {offsets = [0, 0], sizes = [8, 128], strides = [1, 1]} : vector<8x192xf32> to vector<8x128xf32>
    %333 = arith.addf %331, %332 : vector<8x128xf32>
    %334 = vector.extract_strided_slice %330 {offsets = [0, 128], sizes = [8, 64], strides = [1, 1]} : vector<8x192xf32> to vector<8x64xf32>
    %335 = arith.addf %334, %10 : vector<8x64xf32>
    %336 = arith.negf %333 : vector<8x128xf32>
    %337 = math.exp %336 : vector<8x128xf32>
    %cst_47 = arith.constant 1.000000e+00 : f32
    %338 = vector.broadcast %cst_47 : f32 to vector<8x128xf32>
    %339 = arith.addf %338, %337 : vector<8x128xf32>
    %340 = arith.divf %338, %339 : vector<8x128xf32>
    %341 = vector.extract_strided_slice %340 {offsets = [0, 0], sizes = [8, 64], strides = [1, 1]} : vector<8x128xf32> to vector<8x64xf32>
    %342 = vector.extract_strided_slice %340 {offsets = [0, 64], sizes = [8, 64], strides = [1, 1]} : vector<8x128xf32> to vector<8x64xf32>
    %343 = vector.extract_strided_slice %328 {offsets = [0, 128], sizes = [8, 64], strides = [1, 1]} : vector<8x192xf32> to vector<8x64xf32>
    %344 = arith.mulf %341, %335 : vector<8x64xf32>
    %345 = arith.addf %343, %344 : vector<8x64xf32>
    %346 = math.tanh %345 : vector<8x64xf32>
    %347 = arith.subf %303, %346 : vector<8x64xf32>
    %348 = arith.mulf %342, %347 : vector<8x64xf32>
    %349 = arith.addf %346, %348 : vector<8x64xf32>
    %350 = arith.truncf %349 : vector<8x64xf32> to vector<8x64xbf16>
    %cst_48 = arith.constant dense<0.000000e+00> : vector<8x192xf32>
    %351 = tpu.matmul %350, %2, %cst_48 {dimension_numbers = #tpu.dot_dimension_numbers<[1], [0], [0], [1], [0, 0, 1, 1], [], []>} : vector<8x64xbf16>, vector<64x192xbf16>, vector<8x192xf32> -> vector<8x192xf32>
    %352 = arith.addf %351, %7 : vector<8x192xf32>
    %353 = arith.truncf %327 : vector<8x64xf32> to vector<8x64xbf16>
    %cst_49 = arith.constant dense<0.000000e+00> : vector<8x192xf32>
    %354 = tpu.matmul %353, %3, %cst_49 {dimension_numbers = #tpu.dot_dimension_numbers<[1], [0], [0], [1], [0, 0, 1, 1], [], []>} : vector<8x64xbf16>, vector<64x192xbf16>, vector<8x192xf32> -> vector<8x192xf32>
    %355 = vector.extract_strided_slice %352 {offsets = [0, 0], sizes = [8, 128], strides = [1, 1]} : vector<8x192xf32> to vector<8x128xf32>
    %356 = vector.extract_strided_slice %354 {offsets = [0, 0], sizes = [8, 128], strides = [1, 1]} : vector<8x192xf32> to vector<8x128xf32>
    %357 = arith.addf %355, %356 : vector<8x128xf32>
    %358 = vector.extract_strided_slice %354 {offsets = [0, 128], sizes = [8, 64], strides = [1, 1]} : vector<8x192xf32> to vector<8x64xf32>
    %359 = arith.addf %358, %13 : vector<8x64xf32>
    %360 = arith.negf %357 : vector<8x128xf32>
    %361 = math.exp %360 : vector<8x128xf32>
    %cst_50 = arith.constant 1.000000e+00 : f32
    %362 = vector.broadcast %cst_50 : f32 to vector<8x128xf32>
    %363 = arith.addf %362, %361 : vector<8x128xf32>
    %364 = arith.divf %362, %363 : vector<8x128xf32>
    %365 = vector.extract_strided_slice %364 {offsets = [0, 0], sizes = [8, 64], strides = [1, 1]} : vector<8x128xf32> to vector<8x64xf32>
    %366 = vector.extract_strided_slice %364 {offsets = [0, 64], sizes = [8, 64], strides = [1, 1]} : vector<8x128xf32> to vector<8x64xf32>
    %367 = vector.extract_strided_slice %352 {offsets = [0, 128], sizes = [8, 64], strides = [1, 1]} : vector<8x192xf32> to vector<8x64xf32>
    %368 = arith.mulf %365, %359 : vector<8x64xf32>
    %369 = arith.addf %367, %368 : vector<8x64xf32>
    %370 = math.tanh %369 : vector<8x64xf32>
    %371 = arith.subf %327, %370 : vector<8x64xf32>
    %372 = arith.mulf %366, %371 : vector<8x64xf32>
    %373 = arith.addf %370, %372 : vector<8x64xf32>
    %374 = vector.broadcast %15 : vector<1x64xf32> to vector<8x64xf32>
    %375 = arith.mulf %373, %374 : vector<8x64xf32>
    %cst_51 = arith.constant dense<0.000000e+00> : vector<8xf32>
    %376 = vector.multi_reduction <add>, %375, %cst_51 [1] : vector<8x64xf32> to vector<8xf32>
    %377 = vector.shape_cast %376 : vector<8xf32> to vector<8x1xf32>
    %378 = vector.broadcast %14 : vector<1x1xf32> to vector<8x1xf32>
    %379 = arith.addf %377, %378 : vector<8x1xf32>
    %cst_52 = arith.constant 0.000000e+00 : f32
    %380 = vector.broadcast %cst_52 : f32 to vector<8x1xf32>
    %381 = arith.maximumf %379, %380 : vector<8x1xf32>
    %c0_53 = arith.constant 0 : index
    %c0_54 = arith.constant 0 : index
    %382 = vector.load %arg3[%c0_53, %c0_54] : memref<8x1xf32, #tpu.memory_space<vmem>>, vector<8x1xf32>
    tpu.vector_store %arg3[%c0_53, %c0_54], %381 {strides = array<i32>} : memref<8x1xf32, #tpu.memory_space<vmem>>, vector<8x1xf32>,
    return
  }
}

</mosaic_0001>

<bundles_post_ra>
// kernel: gru_predictor_forward.1
= control target key start
LH: loop header
LB: loop body
LE: loop exit
PB: predicated region body
PF: predicated region fallthrough
CT: control target
= control target key end

     0   :  { %v1866_v1 = vmov 0   ;;  %vm108_vm0 = vcmask 130048   ;;  %v45_v4 = vlaneseq  ;;  %s1867_s9 = smov 64   ;;  %vm254_vm1 = vcmask 523264   ;;  %s2520_s1 = inlined_call_operand.vmem [shape: bf16[208,192], index: 1, kind: input, shape index: {}]   ;;  %s2521_s0 = inlined_call_operand.vmem [shape: bf16[64,16], index: 0, kind: input, shape index: {}]   ;;  %s2522_s2 = inlined_call_operand.vmem [shape: f32[8,192], index: 2, kind: input, shape index: {}]   ;;  %s2523_s3 = inlined_call_operand.vmem [shape: f32[8,1], index: 3, kind: output, shape index: {}]  }
   0x1   :  { %v1710_v0 = vld [vmem:[%s2520_s1 + $0x4] ss:$8 sps:$4 sm:$0xff]   ;;  %153 = vmatprep.mubr.bf16.mxu0 %v1866_v1  ;;  %290 = vmatprep.mubr.bf16.mxu1 %v1866_v1  ;;  %v1712_v2 = vld [vmem:[%s2520_s1] ss:$8 sps:$4 sm:$0xff]   ;;  %v1931_v24 = vld [vmem:[%s2520_s1 + $0x54] ss:$8 sps:$4 sm:$0xff]  }
   0x2   :  { %121 = vmatprep.subr.bf16.mxu0 %v1710_v0  ;;  %v1713_v3 = vld [vmem:[%s2521_s0] sm:$0xff]   ;;  %v1901_v5 = vshrl.u32 %v45_v4, 7  ;;  %v1936_v25 = vld [vmem:[%s2520_s1 + $0x50] ss:$8 sps:$4 sm:$0xff]   ;;  %258 = vmatprep.subr.bf16.mxu1 %v1931_v24  ;;  %v1956_v28 = vld [vmem:[%s2520_s1 + $0x74] ss:$8 sps:$4 sm:$0xff]  }
   0x3   :  { %122 = vmatpush1.bf16.msra.mxu0 %v1712_v2  ;;  %v41_v7 = vld [vmem:[%s2522_s2] ss:$8 sm:$0x3]  ;;  %v1924_v19 = vld [vmem:[%s2522_s2 + $0x1] ss:$0 sm:$0xff]  ;;  %259 = vmatpush1.bf16.msra.mxu1 %v1936_v25  ;;  %vm1629_vm2 = vcmask 7168  }
   0x4   :  { %v47_v6 = vsub.s32 0, %v1901_v5  ;;  %v51_v17 = vsub.s32 1, %v1901_v5  ;;  %v1941_v26 = vld [vmem:[%s2520_s1 + $0x64] ss:$8 sps:$4 sm:$0xff]   ;;  %425 = vmatprep.subr.bf16.mxu0 %v1931_v24  ;;  %v1949_v27 = vld [vmem:[%s2520_s1 + $0x60] ss:$8 sps:$4 sm:$0xff]  }
   0x5   :  { %260 = vmatprep.subr.bf16.mxu1 %v1941_v26  ;;  %v1963_v29 = vld [vmem:[%s2520_s1 + $0x70] ss:$8 sps:$4 sm:$0xff]   ;;  %v1970_v30 = vld [vmem:[%s2520_s1 + $0x84] ss:$8 sps:$4 sm:$0xff]   ;;  %v1981_v32 = vld [vmem:[%s2520_s1 + $0x80] ss:$8 sps:$4 sm:$0xff]  }
   0x6   :  { %1642 = vmatmul.mubr.msk.bf16.vlgmr.msra.gmra.mrb[0].mxu0 %vm108_vm0, %v1713_v3  ;;  %v1909_v8 = vrot.slane %v41_v7, %v47_v6  ;;  %v1919_v18 = vrot.slane %v41_v7, %v51_v17  ;;  %v1988_v33 = vld [vmem:[%s2520_s1 + $0x14] ss:$8 sps:$4 sm:$0xff]   ;;  %v1998_v38 = vld [vmem:[%s2520_s1 + $0x10] ss:$8 sps:$4 sm:$0xff]   ;;  %v2005_v40 = vld [vmem:[%s2520_s1 + $0x24] ss:$8 sps:$4 sm:$0xff]  }
   0x7   :  { %163 = vmatprep.mubr.bf16.mxu0 %v1866_v1  ;;  %426 = vmatpush1.bf16.msra.mxu0 %v1936_v25  ;;  %v2012_v41 = vld [vmem:[%s2520_s1 + $0x20] ss:$8 sps:$4 sm:$0xff]   ;;  %v2019_v42 = vld [vmem:[%s2520_s1 + $0x34] ss:$8 sps:$4 sm:$0xff]   ;;  %v2025_v43 = vld [vmem:[%s2520_s1 + $0x30] ss:$8 sps:$4 sm:$0xff]  }
   0x8   :  { %427 = vmatprep.subr.bf16.mxu0 %v1941_v26  ;;  %261 = vmatpush1.bf16.msra.mxu1 %v1949_v27  ;;  %v2031_v44 = vld [vmem:[%s2520_s1 + $0x44] ss:$8 sps:$4 sm:$0xff]   ;;  %v2037_v45 = vld [vmem:[%s2520_s1 + $0x40] ss:$8 sps:$4 sm:$0xff]  }
   0x9   :  { %262 = vmatprep.subr.bf16.mxu1 %v1956_v28  ;;  %v1635_v46 = vld [vmem:[%s2522_s2 + $0x2] ss:$8 sm:$0x3]  ;;  %v2060_v0 = vld [vmem:[%s2522_s2 + $0x3] ss:$0 sm:$0xff] }
   0xa   :  { %v2048_v47 = vrot.slane %v1635_v46, %v47_v6  ;;  %v2055_v63 = vrot.slane %v1635_v46, %v51_v17  ;;  %v2074_v17 = vld [vmem:[%s2520_s1 + $0x94] ss:$8 sps:$4 sm:$0xff]  }
   0xb   :  { %428 = vmatpush1.bf16.msra.mxu0 %v1949_v27 }
   0xc   :  { %429 = vmatprep.subr.bf16.mxu0 %v1956_v28  ;;  %263 = vmatpush1.bf16.msra.mxu1 %v1963_v29 }
   0xd   :  { %264 = vmatprep.subr.bf16.mxu1 %v1970_v30 }
   0xf   :  { %430 = vmatpush1.bf16.msra.mxu0 %v1963_v29 }
  0x10   :  { %431 = vmatprep.subr.bf16.mxu0 %v1970_v30  ;;  %265 = vmatpush1.bf16.msra.mxu1 %v1981_v32 }
  0x11   :  { %358 = vmatprep.subr.bf16.mxu1 %v1988_v33 }
  0x13   :  { %432 = vmatpush1.bf16.msra.mxu0 %v1981_v32 }
  0x14   :  { %573 = vmatprep.subr.bf16.mxu0 %v1988_v33 }
  0xd9   :  { %v155_v9 = vpop.f32.mrb[0].mxu0 }
  0xda   :  { %v156_v10 = vadd.f32 %v155_v9, %v1909_v8  ;;  %v157_v11 = vpop.f32.mrb[1].mxu0 }
  0xdb   :  { %v1912_v12 = vpop.f32.mrb[2].mxu0  ;;  %v158_v21 = vadd.f32 %v157_v11, %v1919_v18 }
  0xdc   :  { %v1646_v13 = vmul.f32 -1.442695, %v156_v10  ;;  %v1914_v14 = vpop.f32.mrb[3].mxu0  ;;  %v160_v55 = vadd.f32 %v1912_v12, %v1909_v8 }
  0xdd   :  { %v162_v12 = vadd.f32 %v1914_v14, %v1919_v18  ;;  %v2084_v14 = vld [vmem:[%s2520_s1 + $0xa4] ss:$8 sps:$4 sm:$0xff]  }
  0xde   :  { %1753 = vpow2.f32 %v1646_v13 }
  0xe8   :  { %v1754_v15 = vpop.eup %1753 }
  0xe9   :  { %v197_v16 = vadd.f32 1.0, %v1754_v15 }
  0xeb   :  { %1755 = vrcp.f32 %v197_v16  ;;  %v1738_v16 = vld [vmem:[%s2521_s0 + $0x8] sm:$0xff]  }
  0xec   :  { %1643 = vmatmul.mubr.msk.bf16.gmra.mrb[4].mxu0 %vm108_vm0, %v1738_v16 }
  0xed   :  { %173 = vmatprep.mubr.bf16.mxu0 %v1866_v1 }
  0xf5   :  { %v1756_v20 = vpop.eup %1755 }
  0xf6   :  { %v200_v22 = vmul.f32 %v1756_v20, %v1924_v19 }
  0xf8   :  { %v201_v23 = vadd.f32 %v200_v22, %v158_v21  ;;  %v2093_v21 = vld [vmem:[%s2520_s1 + $0xa0] ss:$8 sps:$4 sm:$0xff]  }
  0xfa   :  { %1757 = vtanh.f32 %v201_v23 }
 0x104   :  { %v1758_v31 = vpop.eup %1757 }
 0x105   :  { %204 = vrot.lane.b32.xlu0 %v1758_v31, %s1867_s9 }
 0x177   :  { %v205_v34 = vpop.permute.xlu0 %204 }
 0x178   :  { %v207_v35 = vmul.f32 %v1756_v20, %v205_v34  ;;  %v2079_v20 = vld [vmem:[%s2520_s1 + $0x90] ss:$8 sps:$4 sm:$0xff]  }
 0x179   :  { %v1742_v34 = vld [vmem:[%s2521_s0 + $0x18] sm:$0xff]  }
 0x17a   :  { %209 = vrot.lane.b32.xlu0 %v207_v35, %s1867_s9  ;;  %v2112_v35 = vld [vmem:[%s2520_s1 + $0xb4] ss:$8 sps:$4 sm:$0xff]  }
 0x1ec   :  { %v210_v36 = vpop.permute.xlu0 %209 }
 0x1ed   :  { %v1993_v37 = vsub.f32 %v1758_v31, %v210_v36  ;;  %v1739_v31 = vld [vmem:[%s2521_s0 + $0x10] sm:$0xff]  }
 0x1ee   :  { %1644 = vmatmul.mubr.msk.bf16.gmra.mrb[8].mxu0 %vm108_vm0, %v1739_v31  ;;  %v2117_v36 = vld [vmem:[%s2520_s1 + $0xb0] ss:$8 sps:$4 sm:$0xff]  }
 0x1ef   :  { %v213_v39 = vpack.c.bf16 %v1993_v37, %v1993_v37  ;;  %183 = vmatprep.mubr.bf16.mxu0 %v1866_v1 }
 0x1f1   :  { %1655 = vmatmul.mubr.msk.bf16.vlgmr.msra.gmra.mrb[0].mxu1 %vm254_vm1, %v213_v39 }
 0x1f2   :  { %359 = vmatpush1.bf16.msra.mxu1 %v1998_v38  ;;  %390 = vmatprep.mubr.bf16.mxu1 %v1866_v1 }
 0x1f3   :  { %360 = vmatprep.subr.bf16.mxu1 %v2005_v40 }
 0x1f6   :  { %361 = vmatpush1.bf16.msra.mxu1 %v2012_v41  ;;  %1645 = vmatmul.mubr.msk.bf16.gmra.mrb[12].mxu0 %vm108_vm0, %v1742_v34 }
 0x1f7   :  { %362 = vmatprep.subr.bf16.mxu1 %v2019_v42  ;;  %457 = vmatprep.mubr.bf16.mxu0 %v1866_v1 }
 0x1fa   :  { %363 = vmatpush1.bf16.msra.mxu1 %v2025_v43 }
 0x1fb   :  { %364 = vmatprep.subr.bf16.mxu1 %v2031_v44 }
 0x1fe   :  { %365 = vmatpush1.bf16.msra.mxu1 %v2037_v45 }
 0x1ff   :  { %510 = vmatprep.subr.bf16.mxu1 %v2074_v17 }
 0x201   :  { %1665 = vmatmul.mubr.msk.bf16.vlgmr.msra.gmra.mrb[4].mxu1 %vm254_vm1, %v213_v39  ;;  %v2130_v39 = vld [vmem:[%s2520_s1 + $0xc0] ss:$8 sps:$4 sm:$0xff]  }
 0x202   :  { %542 = vmatprep.mubr.bf16.mxu1 %v1866_v1  ;;  %511 = vmatpush1.bf16.msra.mxu1 %v2079_v20 }
 0x203   :  { %512 = vmatprep.subr.bf16.mxu1 %v2084_v14 }
 0x206   :  { %513 = vmatpush1.bf16.msra.mxu1 %v2093_v21 }
 0x207   :  { %514 = vmatprep.subr.bf16.mxu1 %v2112_v35 }
 0x20a   :  { %515 = vmatpush1.bf16.msra.mxu1 %v2117_v36 }
 0x2c4   :  { %v292_v48 = vpop.f32.mrb[0].mxu1 }
 0x2c5   :  { %v293_v49 = vadd.f32 %v292_v48, %v2048_v47  ;;  %v294_v50 = vpop.f32.mrb[1].mxu1 }
 0x2c6   :  { %v296_v51 = vpop.f32.mrb[2].mxu1  ;;  %v295_v3 = vadd.f32 %v294_v50, %v2055_v63 }
 0x2c7   :  { %v1656_v52 = vmul.f32 -1.442695, %v293_v49  ;;  %v297_v53 = vpop.f32.mrb[3].mxu1  ;;  %v165_v51 = vpop.f32.mrb[4].mxu0 }
 0x2c9   :  { %1759 = vpow2.f32 %v1656_v52  ;;  %v2136_v52 = vpop.f32.mrb[5].mxu0 }
 0x2ca   :  { %v2138_v53 = vpop.f32.mrb[6].mxu0 }
 0x2d3   :  { %v1760_v54 = vpop.eup %1759 }
 0x2d4   :  { %v302_v56 = vadd.f32 1.0, %v1760_v54  ;;  %v392_v57 = vpop.f32.mrb[4].mxu1  ;;  %v2140_v54 = vpop.f32.mrb[7].mxu0 }
 0x2d5   :  { %v399_v58 = vadd.f32 %v392_v57, %v160_v55  ;;  %v394_v59 = vpop.f32.mrb[5].mxu1  ;;  %v2142_v55 = vpop.f32.mrb[8].mxu0 }
 0x2d6   :  { %1761 = vrcp.f32 %v302_v56  ;;  %v396_v60 = vpop.f32.mrb[6].mxu1  ;;  %v400_v5 = vadd.f32 %v394_v59, %v1924_v19  ;;  %v2144_v56 = vpop.f32.mrb[9].mxu0 }
 0x2d7   :  { %v1666_v61 = vmul.f32 -1.442695, %v399_v58  ;;  %v397_v62 = vpop.f32.mrb[7].mxu1  ;;  %v2146_v57 = vpop.f32.mrb[10].mxu0 }
 0x2d8   :  { %v2148_v58 = vpop.f32.mrb[11].mxu0 }
 0x2d9   :  { %1763 = vpow2.f32 %v1666_v61  ;;  %v2150_v59 = vpop.f32.mrb[12].mxu0 }
 0x2da   :  { %v2152_v60 = vpop.f32.mrb[13].mxu0 }
 0x2db   :  { %v2154_v61 = vpop.f32.mrb[14].mxu0 }
 0x2dc   :  { %v2156_v62 = vpop.f32.mrb[15].mxu0 }
 0x2e0   :  { %v1762_v2 = vpop.eup %1761 }
 0x2e1   :  { %v305_v4 = vmul.f32 %v1762_v2, %v2060_v0 }
 0x2e3   :  { %v1764_v6 = vpop.eup %1763  ;;  %v306_v7 = vadd.f32 %v305_v4, %v295_v3 }
 0x2e4   :  { %v404_v9 = vadd.f32 1.0, %v1764_v6 }
 0x2e5   :  { %1765 = vtanh.f32 %v306_v7 }
 0x2e6   :  { %1767 = vrcp.f32 %v404_v9 }
 0x2ef   :  { %v1766_v10 = vpop.eup %1765 }
 0x2f0   :  { %v1768_v11 = vpop.eup %1767  ;;  %309 = vrot.lane.b32.xlu0 %v1766_v10, %s1867_s9 }
 0x2f1   :  { %v407_v13 = vmul.f32 %v1768_v11, %v400_v5 }
 0x2f3   :  { %v408_v15 = vadd.f32 %v407_v13, %v162_v12 }
 0x2f5   :  { %1769 = vtanh.f32 %v408_v15 }
 0x2ff   :  { %v1770_v22 = vpop.eup %1769 }
 0x300   :  { %v410_v23 = vsub.f32 %v1993_v37, %v1770_v22  ;;  %v2124_v37 = vld [vmem:[%s2520_s1 + $0xc4] ss:$8 sps:$4 sm:$0xff]  }
 0x301   :  { %516 = vmatprep.subr.bf16.mxu1 %v2124_v37 }
 0x302   :  { %412 = vrot.lane.b32.xlu1 %v410_v23, %s1867_s9  ;;  %517 = vmatpush1.bf16.msra.mxu1 %v2130_v39 }
 0x303   :  { %640 = vmatprep.subr.bf16.mxu1 %v1931_v24 }
 0x362   :  { %v310_v49 = vpop.permute.xlu0 %309 }
 0x363   :  { %v312_v50 = vmul.f32 %v1762_v2, %v310_v49 }
 0x374   :  { %v413_v46 = vpop.permute.xlu1 %412 }
 0x375   :  { %v415_v48 = vmul.f32 %v1768_v11, %v413_v46  ;;  %v166_v46 = vadd.f32 %v165_v51, %v1909_v8 }
 0x377   :  { %417 = vrot.lane.b32.xlu1 %v415_v48, %s1867_s9 }
 0x37b   :  { %314 = vrot.lane.b32.xlu1 %v312_v50, %s1867_s9 }
 0x3e9   :  { %v418_v2 = vpop.permute.xlu1 %417 }
 0x3ea   :  { %v2158_v3 = vadd.f32 %v1770_v22, %v418_v2 }
 0x3ec   :  { %v421_v4 = vpack.c.bf16 %v2158_v3, %v2158_v3 }
 0x3ed   :  { %v315_v6 = vpop.permute.xlu1 %314 }
 0x3ee   :  { %v2162_v7 = vsub.f32 %v1766_v10, %v315_v6  ;;  %1667 = vmatmul.mubr.msk.bf16.vlgmr.msra.gmra.mrb[16].mxu0 %vm254_vm1, %v421_v4 }
 0x3ef   :  { %574 = vmatpush1.bf16.msra.mxu0 %v1998_v38  ;;  %605 = vmatprep.mubr.bf16.mxu0 %v1866_v1 }
 0x3f0   :  { %v466_v9 = vpack.c.bf16 %v2162_v7, %v2162_v7  ;;  %575 = vmatprep.subr.bf16.mxu0 %v2005_v40 }
 0x3f2   :  { %1676 = vmatmul.mubr.msk.bf16.vlgmr.msra.gmra.mrb[8].mxu1 %vm254_vm1, %v466_v9 }
 0x3f3   :  { %576 = vmatpush1.bf16.msra.mxu0 %v2012_v41  ;;  %641 = vmatpush1.bf16.msra.mxu1 %v1936_v25 }
 0x3f4   :  { %577 = vmatprep.subr.bf16.mxu0 %v2019_v42  ;;  %642 = vmatprep.subr.bf16.mxu1 %v1941_v26 }
 0x3f5   :  { %672 = vmatprep.mubr.bf16.mxu1 %v1866_v1 }
 0x3f7   :  { %578 = vmatpush1.bf16.msra.mxu0 %v2025_v43  ;;  %643 = vmatpush1.bf16.msra.mxu1 %v1949_v27 }
 0x3f8   :  { %579 = vmatprep.subr.bf16.mxu0 %v2031_v44  ;;  %644 = vmatprep.subr.bf16.mxu1 %v1956_v28 }
 0x3fb   :  { %580 = vmatpush1.bf16.msra.mxu0 %v2037_v45  ;;  %645 = vmatpush1.bf16.msra.mxu1 %v1963_v29 }
 0x3fc   :  { %685 = vmatprep.subr.bf16.mxu0 %v2074_v17  ;;  %646 = vmatprep.subr.bf16.mxu1 %v1970_v30 }
 0x3fe   :  { %1678 = vmatmul.mubr.msk.bf16.vlgmr.msra.gmra.mrb[20].mxu0 %vm254_vm1, %v421_v4 }
 0x3ff   :  { %686 = vmatpush1.bf16.msra.mxu0 %v2079_v20  ;;  %647 = vmatpush1.bf16.msra.mxu1 %v1981_v32 }
 0x400   :  { %687 = vmatprep.subr.bf16.mxu0 %v2084_v14  ;;  %748 = vmatprep.subr.bf16.mxu1 %v1988_v33 }
 0x401   :  { %717 = vmatprep.mubr.bf16.mxu0 %v1866_v1 }
 0x403   :  { %688 = vmatpush1.bf16.msra.mxu0 %v2093_v21 }
 0x404   :  { %689 = vmatprep.subr.bf16.mxu0 %v2112_v35 }
 0x407   :  { %690 = vmatpush1.bf16.msra.mxu0 %v2117_v36 }
 0x408   :  { %691 = vmatprep.subr.bf16.mxu0 %v2124_v37 }
 0x40b   :  { %692 = vmatpush1.bf16.msra.mxu0 %v2130_v39 }
 0x40c   :  { %815 = vmatprep.subr.bf16.mxu0 %v1931_v24 }
 0x4c1   :  { %v459_v10 = vpop.f32.mrb[16].mxu0 }
 0x4c2   :  { %v461_v5 = vpop.f32.mrb[17].mxu0  ;;  %v460_v12 = vadd.f32 %v459_v10, %v2048_v47 }
 0x4c3   :  { %v463_v11 = vpop.f32.mrb[18].mxu0 }
 0x4c4   :  { %v464_v13 = vpop.f32.mrb[19].mxu0 }
 0x4c5   :  { %v544_v15 = vpop.f32.mrb[8].mxu1 }
 0x4c6   :  { %v551_v16 = vadd.f32 %v544_v15, %v460_v12  ;;  %v546_v22 = vpop.f32.mrb[9].mxu1 }
 0x4c7   :  { %v548_v23 = vpop.f32.mrb[10].mxu1  ;;  %v552_v12 = vadd.f32 %v546_v22, %v2060_v0 }
 0x4c8   :  { %v1677_v31 = vmul.f32 -1.442695, %v551_v16  ;;  %v549_v34 = vpop.f32.mrb[11].mxu1  ;;  %v462_v16 = vadd.f32 %v461_v5, %v2055_v63 }
 0x4ca   :  { %1771 = vpow2.f32 %v1677_v31 }
 0x4d1   :  { %v607_v48 = vpop.f32.mrb[20].mxu0 }
 0x4d2   :  { %v614_v49 = vadd.f32 %v607_v48, %v166_v46  ;;  %v609_v50 = vpop.f32.mrb[21].mxu0  ;;  %v168_v46 = vadd.f32 %v2136_v52, %v1919_v18 }
 0x4d3   :  { %v611_v2 = vpop.f32.mrb[22].mxu0  ;;  %v615_v31 = vadd.f32 %v609_v50, %v1924_v19 }
 0x4d4   :  { %v1772_v4 = vpop.eup %1771  ;;  %v1679_v6 = vmul.f32 -1.442695, %v614_v49  ;;  %v612_v9 = vpop.f32.mrb[23].mxu0 }
 0x4d5   :  { %v556_v11 = vadd.f32 1.0, %v1772_v4 }
 0x4d6   :  { %1773 = vpow2.f32 %v1679_v6 }
 0x4d7   :  { %1775 = vrcp.f32 %v556_v11 }
 0x4e0   :  { %v1774_v10 = vpop.eup %1773 }
 0x4e1   :  { %v1776_v13 = vpop.eup %1775  ;;  %v619_v15 = vadd.f32 1.0, %v1774_v10 }
 0x4e2   :  { %v559_v23 = vmul.f32 %v1776_v13, %v552_v12 }
 0x4e3   :  { %1777 = vrcp.f32 %v619_v15 }
 0x4e4   :  { %v560_v51 = vadd.f32 %v559_v23, %v462_v16 }
 0x4ed   :  { %v1778_v34 = vpop.eup %1777 }
 0x4ee   :  { %v622_v48 = vmul.f32 %v1778_v34, %v615_v31 }
 0x4f0   :  { %v623_v49 = vadd.f32 %v622_v48, %v168_v46 }
 0x4f2   :  { %1779 = vtanh.f32 %v623_v49 }
 0x4f3   :  { %1781 = vtanh.f32 %v560_v51 }
 0x4fc   :  { %v1780_v2 = vpop.eup %1779 }
 0x4fd   :  { %v625_v22 = vsub.f32 %v2158_v3, %v1780_v2  ;;  %v1782_v4 = vpop.eup %1781 }
 0x4fe   :  { %v562_v5 = vsub.f32 %v2162_v7, %v1782_v4 }
 0x4ff   :  { %627 = vrot.lane.b32.xlu0 %v625_v22, %s1867_s9 }
 0x503   :  { %564 = vrot.lane.b32.xlu0 %v562_v5, %s1867_s9 }
 0x571   :  { %v628_v6 = vpop.permute.xlu0 %627 }
 0x572   :  { %v630_v50 = vmul.f32 %v1778_v34, %v628_v6 }
 0x574   :  { %632 = vrot.lane.b32.xlu1 %v630_v50, %s1867_s9 }
 0x575   :  { %v565_v9 = vpop.permute.xlu0 %564 }
 0x576   :  { %v567_v52 = vmul.f32 %v1776_v13, %v565_v9 }
 0x578   :  { %569 = vrot.lane.b32.xlu1 %v567_v52, %s1867_s9 }
 0x5e6   :  { %v633_v11 = vpop.permute.xlu1 %632 }
 0x5e7   :  { %v2209_v10 = vadd.f32 %v1780_v2, %v633_v11 }
 0x5e9   :  { %v636_v3 = vpack.c.bf16 %v2209_v10, %v2209_v10 }
 0x5ea   :  { %v570_v12 = vpop.permute.xlu1 %569 }
 0x5eb   :  { %v2213_v15 = vadd.f32 %v1782_v4, %v570_v12  ;;  %1680 = vmatmul.mubr.msk.bf16.vlgmr.msra.gmra.mrb[12].mxu1 %vm254_vm1, %v636_v3  ;;  %v170_v4 = vadd.f32 %v2138_v53, %v1909_v8 }
 0x5ec   :  { %749 = vmatpush1.bf16.msra.mxu1 %v1998_v38  ;;  %780 = vmatprep.mubr.bf16.mxu1 %v1866_v1 }
 0x5ed   :  { %v681_v7 = vpack.c.bf16 %v2213_v15, %v2213_v15  ;;  %750 = vmatprep.subr.bf16.mxu1 %v2005_v40 }
 0x5ef   :  { %1681 = vmatmul.mubr.msk.bf16.vlgmr.msra.gmra.mrb[24].mxu0 %vm254_vm1, %v681_v7 }
 0x5f0   :  { %751 = vmatpush1.bf16.msra.mxu1 %v2012_v41  ;;  %816 = vmatpush1.bf16.msra.mxu0 %v1936_v25 }
 0x5f1   :  { %752 = vmatprep.subr.bf16.mxu1 %v2019_v42  ;;  %817 = vmatprep.subr.bf16.mxu0 %v1941_v26 }
 0x5f2   :  { %847 = vmatprep.mubr.bf16.mxu0 %v1866_v1 }
 0x5f4   :  { %753 = vmatpush1.bf16.msra.mxu1 %v2025_v43  ;;  %818 = vmatpush1.bf16.msra.mxu0 %v1949_v27 }
 0x5f5   :  { %754 = vmatprep.subr.bf16.mxu1 %v2031_v44  ;;  %819 = vmatprep.subr.bf16.mxu0 %v1956_v28 }
 0x5f8   :  { %755 = vmatpush1.bf16.msra.mxu1 %v2037_v45  ;;  %820 = vmatpush1.bf16.msra.mxu0 %v1963_v29 }
 0x5f9   :  { %860 = vmatprep.subr.bf16.mxu1 %v2074_v17  ;;  %821 = vmatprep.subr.bf16.mxu0 %v1970_v30 }
 0x5fb   :  { %1683 = vmatmul.mubr.msk.bf16.vlgmr.msra.gmra.mrb[16].mxu1 %vm254_vm1, %v636_v3 }
 0x5fc   :  { %861 = vmatpush1.bf16.msra.mxu1 %v2079_v20  ;;  %822 = vmatpush1.bf16.msra.mxu0 %v1981_v32 }
 0x5fd   :  { %862 = vmatprep.subr.bf16.mxu1 %v2084_v14  ;;  %923 = vmatprep.subr.bf16.mxu0 %v1988_v33 }
 0x5fe   :  { %892 = vmatprep.mubr.bf16.mxu1 %v1866_v1 }
 0x600   :  { %863 = vmatpush1.bf16.msra.mxu1 %v2093_v21 }
 0x601   :  { %864 = vmatprep.subr.bf16.mxu1 %v2112_v35 }
 0x604   :  { %865 = vmatpush1.bf16.msra.mxu1 %v2117_v36 }
 0x605   :  { %866 = vmatprep.subr.bf16.mxu1 %v2124_v37 }
 0x608   :  { %867 = vmatpush1.bf16.msra.mxu1 %v2130_v39 }
 0x609   :  { %990 = vmatprep.subr.bf16.mxu1 %v1931_v24 }
 0x6be   :  { %v674_v13 = vpop.f32.mrb[12].mxu1 }
 0x6bf   :  { %v676_v16 = vpop.f32.mrb[13].mxu1  ;;  %v675_v51 = vadd.f32 %v674_v13, %v2048_v47 }
 0x6c0   :  { %v678_v23 = vpop.f32.mrb[14].mxu1 }
 0x6c1   :  { %v679_v31 = vpop.f32.mrb[15].mxu1 }
 0x6c2   :  { %v719_v34 = vpop.f32.mrb[24].mxu0  ;;  %v677_v31 = vadd.f32 %v676_v16, %v2055_v63 }
 0x6c3   :  { %v726_v46 = vadd.f32 %v719_v34, %v675_v51  ;;  %v721_v48 = vpop.f32.mrb[25].mxu0 }
 0x6c4   :  { %v723_v49 = vpop.f32.mrb[26].mxu0  ;;  %v727_v13 = vadd.f32 %v721_v48, %v2060_v0 }
 0x6c5   :  { %v1682_v2 = vmul.f32 -1.442695, %v726_v46  ;;  %v724_v22 = vpop.f32.mrb[27].mxu0 }
 0x6c7   :  { %1783 = vpow2.f32 %v1682_v2  ;;  %v172_v2 = vadd.f32 %v2140_v54, %v1919_v18 }
 0x6ce   :  { %v782_v5 = vpop.f32.mrb[16].mxu1 }
 0x6cf   :  { %v789_v6 = vadd.f32 %v782_v5, %v170_v4  ;;  %v784_v50 = vpop.f32.mrb[17].mxu1 }
 0x6d0   :  { %v786_v9 = vpop.f32.mrb[18].mxu1  ;;  %v790_v46 = vadd.f32 %v784_v50, %v1924_v19 }
 0x6d1   :  { %v1784_v52 = vpop.eup %1783  ;;  %v1684_v11 = vmul.f32 -1.442695, %v789_v6  ;;  %v787_v3 = vpop.f32.mrb[19].mxu1 }
 0x6d2   :  { %v731_v12 = vadd.f32 1.0, %v1784_v52 }
 0x6d3   :  { %1785 = vpow2.f32 %v1684_v11 }
 0x6d4   :  { %1787 = vrcp.f32 %v731_v12 }
 0x6dd   :  { %v1786_v7 = vpop.eup %1785 }
 0x6de   :  { %v1788_v23 = vpop.eup %1787  ;;  %v794_v51 = vadd.f32 1.0, %v1786_v7 }
 0x6df   :  { %v734_v34 = vmul.f32 %v1788_v23, %v727_v13 }
 0x6e0   :  { %1789 = vrcp.f32 %v794_v51 }
 0x6e1   :  { %v735_v53 = vadd.f32 %v734_v34, %v677_v31 }
 0x6ea   :  { %v1790_v49 = vpop.eup %1789 }
 0x6eb   :  { %v797_v22 = vmul.f32 %v1790_v49, %v790_v46 }
 0x6ed   :  { %v798_v4 = vadd.f32 %v797_v22, %v172_v2 }
 0x6ef   :  { %1791 = vtanh.f32 %v798_v4 }
 0x6f0   :  { %1793 = vtanh.f32 %v735_v53 }
 0x6f9   :  { %v1792_v5 = vpop.eup %1791 }
 0x6fa   :  { %v800_v48 = vsub.f32 %v2209_v10, %v1792_v5  ;;  %v1794_v6 = vpop.eup %1793 }
 0x6fb   :  { %v737_v16 = vsub.f32 %v2213_v15, %v1794_v6 }
 0x6fc   :  { %802 = vrot.lane.b32.xlu0 %v800_v48, %s1867_s9 }
 0x700   :  { %739 = vrot.lane.b32.xlu0 %v737_v16, %s1867_s9 }
 0x76e   :  { %v803_v9 = vpop.permute.xlu0 %802 }
 0x76f   :  { %v805_v50 = vmul.f32 %v1790_v49, %v803_v9 }
 0x771   :  { %807 = vrot.lane.b32.xlu1 %v805_v50, %s1867_s9 }
 0x772   :  { %v740_v52 = vpop.permute.xlu0 %739 }
 0x773   :  { %v742_v54 = vmul.f32 %v1788_v23, %v740_v52 }
 0x775   :  { %744 = vrot.lane.b32.xlu1 %v742_v54, %s1867_s9 }
 0x7e3   :  { %v808_v11 = vpop.permute.xlu1 %807 }
 0x7e4   :  { %v2261_v3 = vadd.f32 %v1792_v5, %v808_v11  ;;  %v176_v5 = vadd.f32 %v2142_v55, %v1909_v8 }
 0x7e6   :  { %v811_v10 = vpack.c.bf16 %v2261_v3, %v2261_v3 }
 0x7e7   :  { %v745_v12 = vpop.permute.xlu1 %744 }
 0x7e8   :  { %v2265_v7 = vadd.f32 %v1794_v6, %v745_v12  ;;  %1685 = vmatmul.mubr.msk.bf16.vlgmr.msra.gmra.mrb[28].mxu0 %vm254_vm1, %v811_v10 }
 0x7e9   :  { %924 = vmatpush1.bf16.msra.mxu0 %v1998_v38  ;;  %955 = vmatprep.mubr.bf16.mxu0 %v1866_v1 }
 0x7ea   :  { %v856_v15 = vpack.c.bf16 %v2265_v7, %v2265_v7  ;;  %925 = vmatprep.subr.bf16.mxu0 %v2005_v40 }
 0x7ec   :  { %1686 = vmatmul.mubr.msk.bf16.vlgmr.msra.gmra.mrb[20].mxu1 %vm254_vm1, %v856_v15 }
 0x7ed   :  { %926 = vmatpush1.bf16.msra.mxu0 %v2012_v41  ;;  %991 = vmatpush1.bf16.msra.mxu1 %v1936_v25 }
 0x7ee   :  { %927 = vmatprep.subr.bf16.mxu0 %v2019_v42  ;;  %992 = vmatprep.subr.bf16.mxu1 %v1941_v26 }
 0x7ef   :  { %1022 = vmatprep.mubr.bf16.mxu1 %v1866_v1 }
 0x7f1   :  { %928 = vmatpush1.bf16.msra.mxu0 %v2025_v43  ;;  %993 = vmatpush1.bf16.msra.mxu1 %v1949_v27 }
 0x7f2   :  { %929 = vmatprep.subr.bf16.mxu0 %v2031_v44  ;;  %994 = vmatprep.subr.bf16.mxu1 %v1956_v28 }
 0x7f5   :  { %930 = vmatpush1.bf16.msra.mxu0 %v2037_v45  ;;  %995 = vmatpush1.bf16.msra.mxu1 %v1963_v29 }
 0x7f6   :  { %1035 = vmatprep.subr.bf16.mxu0 %v2074_v17  ;;  %996 = vmatprep.subr.bf16.mxu1 %v1970_v30 }
 0x7f8   :  { %1688 = vmatmul.mubr.msk.bf16.vlgmr.msra.gmra.mrb[32].mxu0 %vm254_vm1, %v811_v10 }
 0x7f9   :  { %1036 = vmatpush1.bf16.msra.mxu0 %v2079_v20  ;;  %1067 = vmatprep.mubr.bf16.mxu0 %v1866_v1 }
 0x7fa   :  { %1037 = vmatprep.subr.bf16.mxu0 %v2084_v14  ;;  %997 = vmatpush1.bf16.msra.mxu1 %v1981_v32 }
 0x7fb   :  { %1098 = vmatprep.subr.bf16.mxu1 %v1988_v33 }
 0x7fd   :  { %1038 = vmatpush1.bf16.msra.mxu0 %v2093_v21 }
 0x7fe   :  { %1039 = vmatprep.subr.bf16.mxu0 %v2112_v35 }
 0x801   :  { %1040 = vmatpush1.bf16.msra.mxu0 %v2117_v36 }
 0x802   :  { %1041 = vmatprep.subr.bf16.mxu0 %v2124_v37 }
 0x805   :  { %1042 = vmatpush1.bf16.msra.mxu0 %v2130_v39 }
 0x806   :  { %1165 = vmatprep.subr.bf16.mxu0 %v1931_v24 }
 0x8bb   :  { %v849_v13 = vpop.f32.mrb[28].mxu0 }
 0x8bc   :  { %v851_v23 = vpop.f32.mrb[29].mxu0  ;;  %v850_v31 = vadd.f32 %v849_v13, %v2048_v47 }
 0x8bd   :  { %v853_v51 = vpop.f32.mrb[30].mxu0 }
 0x8be   :  { %v854_v34 = vpop.f32.mrb[31].mxu0  ;;  %v852_v51 = vadd.f32 %v851_v23, %v2055_v63 }
 0x8bf   :  { %v894_v53 = vpop.f32.mrb[20].mxu1 }
 0x8c0   :  { %v901_v46 = vadd.f32 %v894_v53, %v850_v31  ;;  %v896_v49 = vpop.f32.mrb[21].mxu1 }
 0x8c1   :  { %v898_v2 = vpop.f32.mrb[22].mxu1  ;;  %v902_v12 = vadd.f32 %v896_v49, %v2060_v0 }
 0x8c2   :  { %v1687_v22 = vmul.f32 -1.442695, %v901_v46  ;;  %v899_v4 = vpop.f32.mrb[23].mxu1  ;;  %v178_v46 = vadd.f32 %v2144_v56, %v1919_v18 }
 0x8c4   :  { %1795 = vpow2.f32 %v1687_v22 }
 0x8cb   :  { %v957_v48 = vpop.f32.mrb[32].mxu0 }
 0x8cc   :  { %v964_v6 = vadd.f32 %v957_v48, %v176_v5  ;;  %v959_v16 = vpop.f32.mrb[33].mxu0 }
 0x8cd   :  { %v961_v9 = vpop.f32.mrb[34].mxu0  ;;  %v965_v34 = vadd.f32 %v959_v16, %v1924_v19 }
 0x8ce   :  { %v1796_v50 = vpop.eup %1795  ;;  %v1689_v52 = vmul.f32 -1.442695, %v964_v6  ;;  %v962_v54 = vpop.f32.mrb[35].mxu0 }
 0x8cf   :  { %v906_v11 = vadd.f32 1.0, %v1796_v50 }
 0x8d0   :  { %1797 = vpow2.f32 %v1689_v52 }
 0x8d1   :  { %1799 = vrcp.f32 %v906_v11 }
 0x8da   :  { %v1798_v10 = vpop.eup %1797 }
 0x8db   :  { %v1800_v15 = vpop.eup %1799  ;;  %v969_v13 = vadd.f32 1.0, %v1798_v10 }
 0x8dc   :  { %v909_v31 = vmul.f32 %v1800_v15, %v902_v12 }
 0x8dd   :  { %1801 = vrcp.f32 %v969_v13 }
 0x8de   :  { %v910_v55 = vadd.f32 %v909_v31, %v852_v51 }
 0x8e0   :  { %1803 = vtanh.f32 %v910_v55 }
 0x8e7   :  { %v1802_v53 = vpop.eup %1801 }
 0x8e8   :  { %v972_v2 = vmul.f32 %v1802_v53, %v965_v34 }
 0x8ea   :  { %v1804_v22 = vpop.eup %1803  ;;  %v973_v4 = vadd.f32 %v972_v2, %v178_v46  ;;  %v180_v2 = vadd.f32 %v2146_v57, %v1909_v8 }
 0x8eb   :  { %v912_v5 = vsub.f32 %v2265_v7, %v1804_v22 }
 0x8ec   :  { %1805 = vtanh.f32 %v973_v4 }
 0x8ed   :  { %914 = vrot.lane.b32.xlu1 %v912_v5, %s1867_s9 }
 0x8f6   :  { %v1806_v49 = vpop.eup %1805 }
 0x8f7   :  { %v975_v23 = vsub.f32 %v2261_v3, %v1806_v49 }
 0x8f9   :  { %977 = vrot.lane.b32.xlu0 %v975_v23, %s1867_s9 }
 0x95f   :  { %v915_v48 = vpop.permute.xlu1 %914 }
 0x960   :  { %v917_v6 = vmul.f32 %v1800_v15, %v915_v48 }
 0x962   :  { %919 = vrot.lane.b32.xlu1 %v917_v6, %s1867_s9 }
 0x96b   :  { %v978_v16 = vpop.permute.xlu0 %977 }
 0x96c   :  { %v980_v9 = vmul.f32 %v1802_v53, %v978_v16 }
 0x96e   :  { %982 = vrot.lane.b32.xlu0 %v980_v9, %s1867_s9 }
 0x9d4   :  { %v920_v56 = vpop.permute.xlu1 %919 }
 0x9d5   :  { %v2313_v50 = vadd.f32 %v1804_v22, %v920_v56 }
 0x9d7   :  { %v1031_v7 = vpack.c.bf16 %v2313_v50, %v2313_v50 }
 0x9d9   :  { %1691 = vmatmul.mubr.msk.bf16.vlgmr.msra.gmra.mrb[36].mxu0 %vm254_vm1, %v1031_v7 }
 0x9da   :  { %1166 = vmatpush1.bf16.msra.mxu0 %v1936_v25  ;;  %1197 = vmatprep.mubr.bf16.mxu0 %v1866_v1 }
 0x9db   :  { %1167 = vmatprep.subr.bf16.mxu0 %v1941_v26 }
 0x9de   :  { %1168 = vmatpush1.bf16.msra.mxu0 %v1949_v27 }
 0x9df   :  { %1169 = vmatprep.subr.bf16.mxu0 %v1956_v28 }
 0x9e0   :  { %v983_v3 = vpop.permute.xlu0 %982 }
 0x9e1   :  { %v2323_v52 = vadd.f32 %v1806_v49, %v983_v3 }
 0x9e2   :  { %1170 = vmatpush1.bf16.msra.mxu0 %v1963_v29 }
 0x9e3   :  { %v986_v54 = vpack.c.bf16 %v2323_v52, %v2323_v52  ;;  %1171 = vmatprep.subr.bf16.mxu0 %v1970_v30 }
 0x9e5   :  { %1690 = vmatmul.mubr.msk.bf16.vlgmr.msra.gmra.mrb[24].mxu1 %vm254_vm1, %v986_v54 }
 0x9e6   :  { %1099 = vmatpush1.bf16.msra.mxu1 %v1998_v38  ;;  %1130 = vmatprep.mubr.bf16.mxu1 %v1866_v1 }
 0x9e7   :  { %1100 = vmatprep.subr.bf16.mxu1 %v2005_v40  ;;  %1172 = vmatpush1.bf16.msra.mxu0 %v1981_v32 }
 0x9e8   :  { %1273 = vmatprep.subr.bf16.mxu0 %v1988_v33 }
 0x9ea   :  { %1101 = vmatpush1.bf16.msra.mxu1 %v2012_v41 }
 0x9eb   :  { %1102 = vmatprep.subr.bf16.mxu1 %v2019_v42 }
 0x9ee   :  { %1103 = vmatpush1.bf16.msra.mxu1 %v2025_v43 }
 0x9ef   :  { %1104 = vmatprep.subr.bf16.mxu1 %v2031_v44 }
 0x9f2   :  { %1105 = vmatpush1.bf16.msra.mxu1 %v2037_v45 }
 0x9f3   :  { %1210 = vmatprep.subr.bf16.mxu1 %v2074_v17 }
 0x9f5   :  { %1693 = vmatmul.mubr.msk.bf16.vlgmr.msra.gmra.mrb[28].mxu1 %vm254_vm1, %v986_v54 }
 0x9f6   :  { %1211 = vmatpush1.bf16.msra.mxu1 %v2079_v20  ;;  %1242 = vmatprep.mubr.bf16.mxu1 %v1866_v1 }
 0x9f7   :  { %1212 = vmatprep.subr.bf16.mxu1 %v2084_v14 }
 0x9fa   :  { %1213 = vmatpush1.bf16.msra.mxu1 %v2093_v21 }
 0x9fb   :  { %1214 = vmatprep.subr.bf16.mxu1 %v2112_v35 }
 0x9fe   :  { %1215 = vmatpush1.bf16.msra.mxu1 %v2117_v36 }
 0x9ff   :  { %1216 = vmatprep.subr.bf16.mxu1 %v2124_v37 }
 0xa02   :  { %1217 = vmatpush1.bf16.msra.mxu1 %v2130_v39 }
 0xa03   :  { %1340 = vmatprep.subr.bf16.mxu1 %v1931_v24 }
 0xaac   :  { %v1069_v11 = vpop.f32.mrb[36].mxu0 }
 0xaad   :  { %v1071_v10 = vpop.f32.mrb[37].mxu0 }
 0xaae   :  { %v1073_v12 = vpop.f32.mrb[38].mxu0  ;;  %v1077_v16 = vadd.f32 %v1071_v10, %v2060_v0 }
 0xaaf   :  { %v1074_v15 = vpop.f32.mrb[39].mxu0 }
 0xab8   :  { %v1024_v13 = vpop.f32.mrb[24].mxu1 }
 0xab9   :  { %v1025_v51 = vadd.f32 %v1024_v13, %v2048_v47  ;;  %v1026_v31 = vpop.f32.mrb[25].mxu1  ;;  %v182_v13 = vadd.f32 %v2148_v58, %v1919_v18 }
 0xaba   :  { %v1028_v55 = vpop.f32.mrb[26].mxu1  ;;  %v1027_v7 = vadd.f32 %v1026_v31, %v2055_v63 }
 0xabb   :  { %v1076_v34 = vadd.f32 %v1069_v11, %v1025_v51  ;;  %v1029_v53 = vpop.f32.mrb[27].mxu1 }
 0xabd   :  { %v1692_v46 = vmul.f32 -1.442695, %v1076_v34 }
 0xabf   :  { %1807 = vpow2.f32 %v1692_v46 }
 0xac8   :  { %v1132_v22 = vpop.f32.mrb[28].mxu1 }
 0xac9   :  { %v1808_v4 = vpop.eup %1807  ;;  %v1139_v5 = vadd.f32 %v1132_v22, %v180_v2  ;;  %v1134_v24 = vpop.f32.mrb[29].mxu1 }
 0xaca   :  { %v1081_v49 = vadd.f32 1.0, %v1808_v4  ;;  %v1136_v23 = vpop.f32.mrb[30].mxu1  ;;  %v1140_v57 = vadd.f32 %v1134_v24, %v1924_v19 }
 0xacb   :  { %v1694_v48 = vmul.f32 -1.442695, %v1139_v5  ;;  %v1137_v6 = vpop.f32.mrb[31].mxu1 }
 0xacc   :  { %1809 = vrcp.f32 %v1081_v49 }
 0xacd   :  { %1811 = vpow2.f32 %v1694_v48 }
 0xad6   :  { %v1810_v9 = vpop.eup %1809 }
 0xad7   :  { %v1812_v56 = vpop.eup %1811  ;;  %v1084_v3 = vmul.f32 %v1810_v9, %v1077_v16 }
 0xad8   :  { %v1144_v54 = vadd.f32 1.0, %v1812_v56 }
 0xad9   :  { %v1085_v11 = vadd.f32 %v1084_v3, %v1027_v7 }
 0xada   :  { %1813 = vrcp.f32 %v1144_v54 }
 0xadb   :  { %1815 = vtanh.f32 %v1085_v11 }
 0xae4   :  { %v1814_v12 = vpop.eup %1813 }
 0xae5   :  { %v1816_v15 = vpop.eup %1815  ;;  %v1147_v51 = vmul.f32 %v1814_v12, %v1140_v57 }
 0xae6   :  { %v1087_v55 = vsub.f32 %v2313_v50, %v1816_v15 }
 0xae7   :  { %v1148_v10 = vadd.f32 %v1147_v51, %v182_v13 }
 0xae8   :  { %1089 = vrot.lane.b32.xlu1 %v1087_v55, %s1867_s9 }
 0xae9   :  { %1817 = vtanh.f32 %v1148_v10 }
 0xaf3   :  { %v1818_v31 = vpop.eup %1817 }
 0xaf4   :  { %v1150_v34 = vsub.f32 %v2323_v52, %v1818_v31 }
 0xaf6   :  { %1152 = vrot.lane.b32.xlu0 %v1150_v34, %s1867_s9 }
 0xb5a   :  { %v1090_v53 = vpop.permute.xlu1 %1089 }
 0xb5b   :  { %v1092_v46 = vmul.f32 %v1810_v9, %v1090_v53 }
 0xb5d   :  { %1094 = vrot.lane.b32.xlu1 %v1092_v46, %s1867_s9 }
 0xb68   :  { %v1153_v19 = vpop.permute.xlu0 %1152 }
 0xb69   :  { %v1155_v2 = vmul.f32 %v1814_v12, %v1153_v19 }
 0xb6b   :  { %1157 = vrot.lane.b32.xlu0 %v1155_v2, %s1867_s9 }
 0xbcf   :  { %v1095_v58 = vpop.permute.xlu1 %1094 }
 0xbd0   :  { %v2365_v22 = vadd.f32 %v1816_v15, %v1095_v58 }
 0xbd2   :  { %v1206_v50 = vpack.c.bf16 %v2365_v22, %v2365_v22 }
 0xbd4   :  { %1696 = vmatmul.mubr.msk.bf16.vlgmr.msra.gmra.mrb[32].mxu1 %vm254_vm1, %v1206_v50  ;;  %v1851_v50 = vld [vmem:[%s2520_s1 + $0x50] ss:$8 sps:$4 sm:$0xff]  }
 0xbd5   :  { %1341 = vmatpush1.bf16.msra.mxu1 %v1936_v25  ;;  %1372 = vmatprep.mubr.bf16.mxu1 %v1866_v1  ;;  %v1849_v25 = vld [vmem:[%s2520_s1 + $0x54] ss:$8 sps:$4 sm:$0xff]  }
 0xbd6   :  { %1342 = vmatprep.subr.bf16.mxu1 %v1941_v26 }
 0xbd9   :  { %1343 = vmatpush1.bf16.msra.mxu1 %v1949_v27 }
 0xbda   :  { %1344 = vmatprep.subr.bf16.mxu1 %v1956_v28 }
 0xbdd   :  { %v1158_v52 = vpop.permute.xlu0 %1157  ;;  %1345 = vmatpush1.bf16.msra.mxu1 %v1963_v29 }
 0xbde   :  { %v2376_v4 = vadd.f32 %v1818_v31, %v1158_v52  ;;  %1346 = vmatprep.subr.bf16.mxu1 %v1970_v30  ;;  %v1852_v52 = vld [vmem:[%s2520_s1 + $0x64] ss:$8 sps:$4 sm:$0xff]  }
 0xbe0   :  { %v1161_v5 = vpack.c.bf16 %v2376_v4, %v2376_v4 }
 0xbe1   :  { %1347 = vmatpush1.bf16.msra.mxu1 %v1981_v32 }
 0xbe2   :  { %1695 = vmatmul.mubr.msk.bf16.vlgmr.msra.gmra.mrb[40].mxu0 %vm254_vm1, %v1161_v5  ;;  %1448 = vmatprep.subr.bf16.mxu1 %v1988_v33 }
 0xbe3   :  { %1274 = vmatpush1.bf16.msra.mxu0 %v1998_v38  ;;  %1305 = vmatprep.mubr.bf16.mxu0 %v1866_v1 }
 0xbe4   :  { %1275 = vmatprep.subr.bf16.mxu0 %v2005_v40 }
 0xbe7   :  { %1276 = vmatpush1.bf16.msra.mxu0 %v2012_v41 }
 0xbe8   :  { %1277 = vmatprep.subr.bf16.mxu0 %v2019_v42 }
 0xbeb   :  { %1278 = vmatpush1.bf16.msra.mxu0 %v2025_v43  ;;  %v186_v43 = vadd.f32 %v2150_v59, %v1909_v8  ;;  %v2413_v59 = vld [vmem:[%s2522_s2 + $0x1] ss:$0 sm:$0xff] }
 0xbec   :  { %1279 = vmatprep.subr.bf16.mxu0 %v2031_v44 }
 0xbef   :  { %1280 = vmatpush1.bf16.msra.mxu0 %v2037_v45 }
 0xbf0   :  { %1385 = vmatprep.subr.bf16.mxu0 %v2074_v17 }
 0xbf2   :  { %1698 = vmatmul.mubr.msk.bf16.vlgmr.msra.gmra.mrb[44].mxu0 %vm254_vm1, %v1161_v5  ;;  %v1854_v5 = vld [vmem:[%s2520_s1 + $0x74] ss:$8 sps:$4 sm:$0xff]  }
 0xbf3   :  { %1386 = vmatpush1.bf16.msra.mxu0 %v2079_v20  ;;  %1417 = vmatprep.mubr.bf16.mxu0 %v1866_v1 }
 0xbf4   :  { %1387 = vmatprep.subr.bf16.mxu0 %v2084_v14 }
 0xbf7   :  { %1388 = vmatpush1.bf16.msra.mxu0 %v2093_v21 }
 0xbf8   :  { %1389 = vmatprep.subr.bf16.mxu0 %v2112_v35 }
 0xbfb   :  { %1390 = vmatpush1.bf16.msra.mxu0 %v2117_v36 }
 0xbfc   :  { %1391 = vmatprep.subr.bf16.mxu0 %v2124_v37 }
 0xbff   :  { %1392 = vmatpush1.bf16.msra.mxu0 %v2130_v39 }
 0xc00   :  { %1515 = vmatprep.subr.bf16.mxu0 %v1849_v25 }
 0xca7   :  { %v1244_v26 = vpop.f32.mrb[32].mxu1 }
 0xca8   :  { %v1246_v27 = vpop.f32.mrb[33].mxu1 }
 0xca9   :  { %v1248_v28 = vpop.f32.mrb[34].mxu1  ;;  %v1252_v9 = vadd.f32 %v1246_v27, %v2060_v0  ;;  %v188_v0 = vadd.f32 %v2152_v60, %v1919_v18 }
 0xcaa   :  { %v1249_v29 = vpop.f32.mrb[35].mxu1  ;;  %v1856_v28 = vld [vmem:[%s2520_s1 + $0x84] ss:$8 sps:$4 sm:$0xff]  }
 0xcb5   :  { %v1199_v30 = vpop.f32.mrb[40].mxu0 }
 0xcb6   :  { %v1200_v32 = vadd.f32 %v1199_v30, %v2048_v47  ;;  %v1201_v33 = vpop.f32.mrb[41].mxu0  ;;  %v1857_v30 = vld [vmem:[%s2520_s1 + $0x80] ss:$8 sps:$4 sm:$0xff]  }
 0xcb7   :  { %v1203_v38 = vpop.f32.mrb[42].mxu0  ;;  %v1202_v3 = vadd.f32 %v1201_v33, %v2055_v63  ;;  %v1859_v33 = vld [vmem:[%s2520_s1 + $0x24] ss:$8 sps:$4 sm:$0xff]  }
 0xcb8   :  { %v1251_v40 = vadd.f32 %v1244_v26, %v1200_v32  ;;  %v1204_v41 = vpop.f32.mrb[43].mxu0  ;;  %v1855_v26 = vld [vmem:[%s2520_s1 + $0x70] ss:$8 sps:$4 sm:$0xff]   ;;  %v1860_v38 = vld [vmem:[%s2520_s1 + $0x20] ss:$8 sps:$4 sm:$0xff]  }
 0xcb9   :  { %v1858_v32 = vld [vmem:[%s2520_s1 + $0x10] ss:$8 sps:$4 sm:$0xff]  }
 0xcba   :  { %v1697_v42 = vmul.f32 -1.442695, %v1251_v40  ;;  %v1861_v40 = vld [vmem:[%s2520_s1 + $0x34] ss:$8 sps:$4 sm:$0xff]   ;;  %v1862_v41 = vld [vmem:[%s2520_s1 + $0x30] ss:$8 sps:$4 sm:$0xff]  }
 0xcbc   :  { %1819 = vpow2.f32 %v1697_v42  ;;  %v1863_v42 = vld [vmem:[%s2520_s1 + $0x44] ss:$8 sps:$4 sm:$0xff]  }
 0xcc5   :  { %v1307_v44 = vpop.f32.mrb[44].mxu0 }
 0xcc6   :  { %v1820_v45 = vpop.eup %1819  ;;  %v1314_v24 = vadd.f32 %v1307_v44, %v186_v43  ;;  %v1309_v49 = vpop.f32.mrb[45].mxu0  ;;  %v1864_v43 = vld [vmem:[%s2520_s1 + $0x40] ss:$8 sps:$4 sm:$0xff]  }
 0xcc7   :  { %v1256_v23 = vadd.f32 1.0, %v1820_v45  ;;  %v1311_v48 = vpop.f32.mrb[46].mxu0  ;;  %v1315_v12 = vadd.f32 %v2413_v59, %v1309_v49 }
 0xcc8   :  { %v1699_v6 = vmul.f32 -1.442695, %v1314_v24  ;;  %v1312_v16 = vpop.f32.mrb[47].mxu0 }
 0xcc9   :  { %1821 = vrcp.f32 %v1256_v23 }
 0xcca   :  { %1823 = vpow2.f32 %v1699_v6 }
 0xcd3   :  { %v1822_v56 = vpop.eup %1821 }
 0xcd4   :  { %v1824_v7 = vpop.eup %1823  ;;  %v1259_v54 = vmul.f32 %v1822_v56, %v1252_v9 }
 0xcd5   :  { %v1319_v11 = vadd.f32 1.0, %v1824_v7 }
 0xcd6   :  { %v1260_v57 = vadd.f32 %v1259_v54, %v1202_v3  ;;  %v1865_v3 = vld [vmem:[%s2522_s2 + $0x3] ss:$0 sm:$0xff] }
 0xcd7   :  { %1825 = vrcp.f32 %v1319_v11 }
 0xcd8   :  { %1827 = vtanh.f32 %v1260_v57 }
 0xce1   :  { %v1826_v15 = vpop.eup %1825 }
 0xce2   :  { %v1828_v13 = vpop.eup %1827  ;;  %v1322_v51 = vmul.f32 %v1826_v15, %v1315_v12 }
 0xce3   :  { %v1262_v55 = vsub.f32 %v2365_v22, %v1828_v13 }
 0xce4   :  { %v1323_v10 = vadd.f32 %v1322_v51, %v188_v0 }
 0xce5   :  { %1264 = vrot.lane.b32.xlu1 %v1262_v55, %s1867_s9  ;;  %v192_v55 = vadd.f32 %v2156_v62, %v1919_v18 }
 0xce6   :  { %1829 = vtanh.f32 %v1323_v10 }
 0xcf0   :  { %v1830_v31 = vpop.eup %1829 }
 0xcf1   :  { %v1325_v34 = vsub.f32 %v2376_v4, %v1830_v31  ;;  %v1853_v4 = vld [vmem:[%s2520_s1 + $0x60] ss:$8 sps:$4 sm:$0xff]  }
 0xcf3   :  { %1327 = vrot.lane.b32.xlu0 %v1325_v34, %s1867_s9 }
 0xd57   :  { %v1265_v53 = vpop.permute.xlu1 %1264 }
 0xd58   :  { %v1267_v46 = vmul.f32 %v1822_v56, %v1265_v53 }
 0xd5a   :  { %1269 = vrot.lane.b32.xlu1 %v1267_v46, %s1867_s9 }
 0xd65   :  { %v1328_v19 = vpop.permute.xlu0 %1327 }
 0xd66   :  { %v1330_v2 = vmul.f32 %v1826_v15, %v1328_v19 }
 0xd68   :  { %1332 = vrot.lane.b32.xlu0 %v1330_v2, %s1867_s9 }
 0xdcc   :  { %v1270_v60 = vpop.permute.xlu1 %1269 }
 0xdcd   :  { %v2424_v58 = vadd.f32 %v1828_v13, %v1270_v60 }
 0xdcf   :  { %v1381_v22 = vpack.c.bf16 %v2424_v58, %v2424_v58 }
 0xdd1   :  { %1701 = vmatmul.mubr.msk.bf16.vlgmr.msra.gmra.mrb[48].mxu0 %vm254_vm1, %v1381_v22 }
 0xdd2   :  { %1516 = vmatpush1.bf16.msra.mxu0 %v1851_v50  ;;  %1547 = vmatprep.mubr.bf16.mxu0 %v1866_v1 }
 0xdd3   :  { %1517 = vmatprep.subr.bf16.mxu0 %v1852_v52 }
 0xdd6   :  { %1518 = vmatpush1.bf16.msra.mxu0 %v1853_v4 }
 0xdd7   :  { %1519 = vmatprep.subr.bf16.mxu0 %v1854_v5 }
 0xdda   :  { %v1333_v25 = vpop.permute.xlu0 %1332  ;;  %1520 = vmatpush1.bf16.msra.mxu0 %v1855_v26 }
 0xddb   :  { %v2445_v27 = vadd.f32 %v1830_v31, %v1333_v25  ;;  %1521 = vmatprep.subr.bf16.mxu0 %v1856_v28 }
 0xddd   :  { %v1336_v29 = vpack.c.bf16 %v2445_v27, %v2445_v27 }
 0xdde   :  { %1522 = vmatpush1.bf16.msra.mxu0 %v1857_v30 }
 0xddf   :  { %1700 = vmatmul.mubr.msk.bf16.vlgmr.msra.gmra.mrb[36].mxu1 %vm254_vm1, %v1336_v29 }
 0xde0   :  { %1449 = vmatpush1.bf16.msra.mxu1 %v1858_v32  ;;  %1480 = vmatprep.mubr.bf16.mxu1 %v1866_v1 }
 0xde1   :  { %1450 = vmatprep.subr.bf16.mxu1 %v1859_v33 }
 0xde4   :  { %1451 = vmatpush1.bf16.msra.mxu1 %v1860_v38 }
 0xde5   :  { %1452 = vmatprep.subr.bf16.mxu1 %v1861_v40 }
 0xde8   :  { %1453 = vmatpush1.bf16.msra.mxu1 %v1862_v41 }
 0xde9   :  { %1454 = vmatprep.subr.bf16.mxu1 %v1863_v42 }
 0xdec   :  { %1455 = vmatpush1.bf16.msra.mxu1 %v1864_v43 }
 0xded   :  { %1560 = vmatprep.subr.bf16.mxu1 %v2074_v17 }
 0xdef   :  { %1703 = vmatmul.mubr.msk.bf16.vlgmr.msra.gmra.mrb[40].mxu1 %vm254_vm1, %v1336_v29 }
 0xdf0   :  { %1561 = vmatpush1.bf16.msra.mxu1 %v2079_v20  ;;  %1592 = vmatprep.mubr.bf16.mxu1 %v1866_v1 }
 0xdf1   :  { %1562 = vmatprep.subr.bf16.mxu1 %v2084_v14 }
 0xdf4   :  { %1563 = vmatpush1.bf16.msra.mxu1 %v2093_v21 }
 0xdf5   :  { %1564 = vmatprep.subr.bf16.mxu1 %v2112_v35  ;;  %v190_v35 = vadd.f32 %v2154_v61, %v1909_v8 }
 0xdf8   :  { %1565 = vmatpush1.bf16.msra.mxu1 %v2117_v36 }
 0xdf9   :  { %1566 = vmatprep.subr.bf16.mxu1 %v2124_v37 }
 0xdfc   :  { %1567 = vmatpush1.bf16.msra.mxu1 %v2130_v39 }
 0xea4   :  { %v1419_v44 = vpop.f32.mrb[48].mxu0 }
 0xea5   :  { %v1421_v17 = vpop.f32.mrb[49].mxu0 }
 0xea6   :  { %v1423_v45 = vpop.f32.mrb[50].mxu0  ;;  %v1427_v54 = vadd.f32 %v1865_v3, %v1421_v17 }
 0xea7   :  { %v1424_v24 = vpop.f32.mrb[51].mxu0 }
 0xeb2   :  { %v1374_v49 = vpop.f32.mrb[36].mxu1 }
 0xeb3   :  { %v1375_v20 = vadd.f32 %v1374_v49, %v2048_v47  ;;  %v1376_v1 = vpop.f32.mrb[37].mxu1 }
 0xeb4   :  { %v1378_v23 = vpop.f32.mrb[38].mxu1  ;;  %v1377_v12 = vadd.f32 %v1376_v1, %v2055_v63 }
 0xeb5   :  { %v1426_v14 = vadd.f32 %v1419_v44, %v1375_v20  ;;  %v1379_v48 = vpop.f32.mrb[39].mxu1  ;;  %v58_v23 = vld [vmem:[%s2522_s2 + $0x5] ss:$0 sm:$0xff] }
 0xeb7   :  { %v1702_v21 = vmul.f32 -1.442695, %v1426_v14 }
 0xeb9   :  { %1831 = vpow2.f32 %v1702_v21  ;;  %v57_v21 = vld [vmem:[%s2522_s2 + $0x4] ss:$0 sm:$0xff] }
 0xec2   :  { %v1482_v36 = vpop.f32.mrb[40].mxu1 }
 0xec3   :  { %v1832_v37 = vpop.eup %1831  ;;  %v1489_v6 = vadd.f32 %v1482_v36, %v190_v35  ;;  %v1484_v39 = vpop.f32.mrb[41].mxu1 }
 0xec4   :  { %v1431_v16 = vadd.f32 1.0, %v1832_v37  ;;  %v1486_v9 = vpop.f32.mrb[42].mxu1  ;;  %v1490_v13 = vadd.f32 %v2413_v59, %v1484_v39 }
 0xec5   :  { %v1704_v56 = vmul.f32 -1.442695, %v1489_v6  ;;  %v1487_v7 = vpop.f32.mrb[43].mxu1 }
 0xec6   :  { %1833 = vrcp.f32 %v1431_v16 }
 0xec7   :  { %1835 = vpow2.f32 %v1704_v56 }
 0xed0   :  { %v1834_v11 = vpop.eup %1833 }
 0xed1   :  { %v1836_v57 = vpop.eup %1835  ;;  %v1434_v8 = vmul.f32 %v1834_v11, %v1427_v54 }
 0xed2   :  { %v1494_v61 = vadd.f32 1.0, %v1836_v57 }
 0xed3   :  { %v1435_v15 = vadd.f32 %v1434_v8, %v1377_v12 }
 0xed4   :  { %1837 = vrcp.f32 %v1494_v61 }
 0xed5   :  { %1839 = vtanh.f32 %v1435_v15 }
 0xede   :  { %v1838_v0 = vpop.eup %1837 }
 0xedf   :  { %v1840_v51 = vpop.eup %1839  ;;  %v1497_v10 = vmul.f32 %v1838_v0, %v1490_v13 }
 0xee0   :  { %v1437_v31 = vsub.f32 %v2424_v58, %v1840_v51 }
 0xee1   :  { %v1498_v34 = vadd.f32 %v1497_v10, %v192_v55 }
 0xee2   :  { %1439 = vrot.lane.b32.xlu1 %v1437_v31, %s1867_s9 }
 0xee3   :  { %1841 = vtanh.f32 %v1498_v34 }
 0xeed   :  { %v1842_v53 = vpop.eup %1841 }
 0xeee   :  { %v1500_v46 = vsub.f32 %v2445_v27, %v1842_v53 }
 0xef0   :  { %1502 = vrot.lane.b32.xlu0 %v1500_v46, %s1867_s9 }
 0xf54   :  { %v1440_v19 = vpop.permute.xlu1 %1439 }
 0xf55   :  { %v1442_v2 = vmul.f32 %v1834_v11, %v1440_v19 }
 0xf57   :  { %1444 = vrot.lane.b32.xlu1 %v1442_v2, %s1867_s9 }
 0xf62   :  { %v1503_v59 = vpop.permute.xlu0 %1502 }
 0xf63   :  { %v1505_v60 = vmul.f32 %v1838_v0, %v1503_v59 }
 0xf65   :  { %1507 = vrot.lane.b32.xlu0 %v1505_v60, %s1867_s9 }
 0xfc9   :  { %v1445_v18 = vpop.permute.xlu1 %1444 }
 0xfca   :  { %v1447_v62 = vadd.f32 %v1840_v51, %v1445_v18 }
 0xfcc   :  { %v1556_v58 = vpack.c.bf16 %v1447_v62, %v1447_v62 }
 0xfce   :  { %1706 = vmatmul.mubr.msk.bf16.vlgmr.msra.gmra.mrb[44].mxu1 %vm254_vm1, %v1556_v58 }
 0xfd7   :  { %v1508_v22 = vpop.permute.xlu0 %1507 }
 0xfd8   :  { %v1510_v50 = vadd.f32 %v1842_v53, %v1508_v22 }
 0xfda   :  { %v1511_v52 = vpack.c.bf16 %v1510_v50, %v1510_v50 }
 0xfdc   :  { %1705 = vmatmul.mubr.msk.bf16.vlgmr.msra.gmra.mrb[52].mxu0 %vm254_vm1, %v1511_v52 }
0x10a1   :  { %v1594_v4 = vpop.f32.mrb[44].mxu1 }
0x10a2   :  { %v1596_v5 = vpop.f32.mrb[45].mxu1 }
0x10a3   :  { %v1598_v25 = vpop.f32.mrb[46].mxu1  ;;  %v1602_v42 = vadd.f32 %v1865_v3, %v1596_v5 }
0x10a4   :  { %v1599_v26 = vpop.f32.mrb[47].mxu1 }
0x10af   :  { %v1549_v27 = vpop.f32.mrb[52].mxu0 }
0x10b0   :  { %v1550_v28 = vadd.f32 %v1549_v27, %v2048_v47  ;;  %v1551_v29 = vpop.f32.mrb[53].mxu0 }
0x10b1   :  { %v1553_v30 = vpop.f32.mrb[54].mxu0  ;;  %v1552_v44 = vadd.f32 %v1551_v29, %v2055_v63 }
0x10b2   :  { %v1601_v32 = vadd.f32 %v1594_v4, %v1550_v28  ;;  %v1554_v33 = vpop.f32.mrb[55].mxu0 }
0x10b4   :  { %v1707_v38 = vmul.f32 -1.442695, %v1601_v32 }
0x10b6   :  { %1843 = vpow2.f32 %v1707_v38 }
0x10c0   :  { %v1844_v40 = vpop.eup %1843 }
0x10c1   :  { %v1606_v41 = vadd.f32 1.0, %v1844_v40 }
0x10c3   :  { %1845 = vrcp.f32 %v1606_v41 }
0x10cd   :  { %v1846_v43 = vpop.eup %1845 }
0x10ce   :  { %v1609_v17 = vmul.f32 %v1846_v43, %v1602_v42 }
0x10d0   :  { %v1610_v45 = vadd.f32 %v1609_v17, %v1552_v44 }
0x10d2   :  { %1847 = vtanh.f32 %v1610_v45 }
0x10dc   :  { %v1848_v24 = vpop.eup %1847 }
0x10dd   :  { %v1612_v49 = vsub.f32 %v1447_v62, %v1848_v24 }
0x10df   :  { %1614 = vrot.lane.b32.xlu0 %v1612_v49, %s1867_s9 }
0x1151   :  { %v1615_v47 = vpop.permute.xlu0 %1614 }
0x1152   :  { %v1617_v20 = vmul.f32 %v1846_v43, %v1615_v47 }
0x1154   :  { %1619 = vrot.lane.b32.xlu1 %v1617_v20, %s1867_s9 }
0x11c6   :  { %v1620_v1 = vpop.permute.xlu1 %1619 }
0x11c7   :  { %v1622_v14 = vadd.f32 %v1848_v24, %v1620_v1 }
0x11c9   :  { %v1623_v48 = vmul.f32 %v1622_v14, %v58_v23 }
0x11cb   :  { %v1624_v63 = vsel %vm254_vm1, %v1623_v48, 0.0 }
0x11cc   :  { %1625 = vadd.xlane.f32.xlu0 %v1624_v63 }
0x1259   :  { %v1626_v35 = vpop.xlane.xlu0 %1625 }
0x125a   :  { %v1627_v36 = vadd.f32 %v1626_v35, %v57_v21 }
0x125c   :  { %v1628_v37 = vmax.f32 %v1627_v36, 0.0 }
0x125e   :  { %1630 = vst.msk [vmem:[%s2523_s3] sm:$0xff] %vm1629_vm2, %v1628_v37 }

</bundles_post_ra>
